<compile_context>
chip_gen: v6e
topology: v6e:2x2x1
jax: 0.10.0
libtpu: 0.0.40
codegen_flags: <defaults>
</compile_context>

<pallas_src>
import functools

import jax
import jax.numpy as jnp
from jax.experimental import pallas as pl
from jax.experimental.pallas import tpu as pltpu

INF = 1.0e9   # matches the module default
EPS = 1.0e-5  # PyTorch LayerNorm default

_CompilerParams = getattr(pltpu, "CompilerParams",
                          getattr(pltpu, "TPUCompilerParams", None))


def _layer_norm(x, w, b):
    mu = jnp.mean(x, axis=-1, keepdims=True)
    var = jnp.mean((x - mu) ** 2, axis=-1, keepdims=True)
    return (x - mu) * jax.lax.rsqrt(var + EPS) * w + b


def _layer_norm_noaffine(x):
    mu = jnp.mean(x, axis=-1, keepdims=True)
    var = jnp.mean((x - mu) ** 2, axis=-1, keepdims=True)
    return (x - mu) * jax.lax.rsqrt(var + EPS)


def _pick_tile(total, target, quantum=1, cap=None):
    """Largest divisor of `total` that is <= target (and <= cap) and a multiple
    of `quantum` (falls back to the full extent, which is always legal)."""
    total = int(total)
    target = int(max(1, min(total, target)))
    if cap is not None:
        target = int(max(1, min(target, cap)))
    for t in range(target, 0, -1):
        if total % t == 0 and (t % quantum == 0 or t == total):
            return t
    return total


def _vmem_budget_bytes():
    """Generation-aware VMEM budget: use most of the 128 MiB on v5e/v6e,
    stay conservative on v7x's 64 MiB."""
    try:
        cap = int(pltpu.get_tpu_info().vmem_capacity_bytes)
    except Exception:
        cap = 64 * 1024 * 1024
    return int(min(0.8 * cap, 112 * 1024 * 1024))


# ---------------------------------------------------------------------------
# Kernel A: pair-bias attention weights, written as a[b, q, h, k]
# ---------------------------------------------------------------------------
def _attn_weights_kernel(bias_ref, z_ref, wz_ref, a_ref):
    _, ti, n, cz = z_ref.shape
    h = wz_ref.shape[1]

    # LayerNorm(z) without affine: scale folded into wz, bias cancels in the
    # softmax over keys.  Flattened 2-D view keeps full (8,128) tiles.
    z2 = z_ref[0].reshape(ti * n, cz).astype(jnp.float32)
    z_ln = _layer_norm_noaffine(z2).astype(wz_ref.dtype)

    # Pair-bias logits: one 2-D matmul, then move heads to the sublane axis so
    # the softmax reduces along dense lanes (keys).
    logits = jnp.dot(z_ln, wz_ref[...],
                     preferred_element_type=jnp.float32)      # [ti*n, H]
    logits = logits.reshape(ti, n, h)                         # row split (free)
    logits = jnp.swapaxes(logits, 1, 2)                       # [ti, H, n]

    # Mask bias (precomputed per batch in the wrapper), added along keys.
    logits = logits + bias_ref[0]                             # [1, n] broadcast

    # Softmax over keys (last axis); EUP approximate reciprocal for the denom.
    logits = logits - jnp.max(logits, axis=-1, keepdims=True)
    p = jnp.exp(logits)
    denom = jnp.sum(p, axis=-1, keepdims=True)
    if hasattr(pl, "reciprocal"):
        inv = pl.reciprocal(denom, approx=True)
    else:
        inv = 1.0 / denom
    a_ref[0] = (p * inv).astype(a_ref.dtype)                  # [ti, H, n]


# ---------------------------------------------------------------------------
# Kernel B: streamed MSA-row tiles (LN, fused v|g, wide a@v, gate, out proj)
# ---------------------------------------------------------------------------
def _msa_avg_kernel(m_ref, a_ref, lnm_w_ref, lnm_b_ref, wvg_ref, wo_ref,
                    out_ref, *, no_heads, c_hidden):
    _, ts, n, cm = m_ref.shape
    c = c_hidden
    hc = no_heads * c
    cdt = wvg_ref.dtype  # MXU-operand dtype; accumulation stays f32

    # LayerNorm + one fused v|gate projection on a flattened 2-D view.
    x = m_ref[0].reshape(ts * n, cm).astype(jnp.float32)
    x = _layer_norm(x, lnm_w_ref[0].astype(jnp.float32),
                    lnm_b_ref[0].astype(jnp.float32)).astype(cdt)
    vg = jnp.dot(x, wvg_ref[...], preferred_element_type=jnp.float32)  # [ts*n, 2Hc]
    g = jax.nn.sigmoid(vg[:, hc:])                                     # f32 gate
    v = vg[:, :hc].astype(cdt).reshape(ts, n, hc)                      # [ts, n, Hc]

    # Pair-weighted averaging.  a_ref holds the cached weights in key-major
    # layout (a_ref[0, h] == a[h].T : [N_k, N_q]), so every head is one wide
    # MXU matmul [TS*c, N_k] @ [N_k, N_q] instead of TS narrow c-wide ones.
    o_heads = []
    for hh in range(no_heads):                                # static head count
        v_h = v[:, :, hh * c:(hh + 1) * c]                    # [ts, n_k, c]
        lhs = jnp.swapaxes(v_h, 1, 2).reshape(ts * c, n)      # [ts*c, n_k]
        o_t = jnp.dot(lhs, a_ref[0, hh],
                      preferred_element_type=jnp.float32)     # [ts*c, n_q]
        o_heads.append(jnp.swapaxes(o_t.reshape(ts, c, n), 1, 2))  # [ts, n_q, c]
    o = jnp.concatenate(o_heads, axis=-1).reshape(ts * n, hc)      # [ts*n, Hc]

    # Gate, then ONE fused output projection with K = H * c_hidden.
    og = (o * g).astype(cdt)
    out = jnp.dot(og, wo_ref[...], preferred_element_type=jnp.float32)
    out_ref[0] = out.reshape(ts, n, cm).astype(out_ref.dtype)


# ---------------------------------------------------------------------------
# Wrapper
# ---------------------------------------------------------------------------
def msa_pair_weighted_averaging(m, z, mask, params, no_heads, c_hidden,
                                *, vmem_budget_bytes=None):
    B, S, N, Cm = m.shape
    Cz = z.shape[-1]
    H, c = no_heads, c_hidden
    Hc = H * c
    cdt = m.dtype  # compute dtype for MXU operands (bf16 in production)
    budget = int(vmem_budget_bytes or _vmem_budget_bytes())

    # Weight prep (tiny, wrapper side).
    lnz_w = jnp.asarray(params['lnz_w']).astype(jnp.float32).reshape(Cz)
    wz_f = (lnz_w[:, None] *
            jnp.asarray(params['wz']).astype(jnp.float32)).astype(cdt)   # [Cz, H]
    wvg = jnp.concatenate([jnp.asarray(params['wv']),
                           jnp.asarray(params['wg'])], axis=1).astype(cdt)  # [Cm, 2Hc]
    wo = jnp.asarray(params['wo']).astype(cdt)                           # [Hc, Cm]
    lnm_w = jnp.asarray(params['lnm_w']).astype(jnp.float32).reshape(1, Cm)
    lnm_b = jnp.asarray(params['lnm_b']).astype(jnp.float32).reshape(1, Cm)

    # Mask bias precomputed once: inf * (max_s mask - 1), shape [B, 1, N] f32.
    mask_bias = (INF * (jnp.max(mask.astype(jnp.float32), axis=1) - 1.0)
                 ).reshape(B, 1, N)

    # -------- kernel A: attention weights, tiled over query-token rows ------
    z_bytes = jnp.dtype(z.dtype).itemsize
    row_a = N * Cz * (2 * z_bytes + 8) + N * H * 16 + N * 4   # live bytes / query row
    ti_cap = (N // 2 if (B == 1 and N >= 16) else N)          # >=2 steps for megacore
    TI = _pick_tile(N, max(8, budget // (2 * row_a)), quantum=8, cap=ti_cap)

    a_arr = pl.pallas_call(
        _attn_weights_kernel,
        out_shape=jax.ShapeDtypeStruct((B, N, H, N), cdt),
        grid_spec=pltpu.PrefetchScalarGridSpec(
            num_scalar_prefetch=0,
            grid=(B, N // TI),
            in_specs=[
                pl.BlockSpec((1, 1, N), lambda b, i: (b, 0, 0)),           # mask bias
                pl.BlockSpec((1, TI, N, Cz), lambda b, i: (b, i, 0, 0)),   # z
                pl.BlockSpec((Cz, H), lambda b, i: (0, 0)),                # folded linear_z
            ],
            out_specs=pl.BlockSpec((1, TI, H, N), lambda b, i: (b, i, 0, 0)),
        ),
        compiler_params=_CompilerParams(
            dimension_semantics=("parallel", "parallel"),
            vmem_limit_bytes=budget),
    )(mask_bias, z, wz_f)

    # Key-major cache for kernel B: a_t[b, h, k, q] (pure layout plumbing).
    a_t = jnp.transpose(a_arr, (0, 2, 3, 1))

    # -------- kernel B: streamed MSA-row tiles -------------------------------
    ib = jnp.dtype(cdt).itemsize
    a_bytes = H * N * N * ib
    # live bytes per MSA row (tile unit): m/out blocks, f32 vg/g/o, cdt v/og.
    row_b = N * (Cm * (4 * ib + 8) + Hc * (16 + 3 * ib))
    w_bytes = (Cm * 2 * Hc + Hc * Cm) * ib
    avail = max(row_b, budget - a_bytes - w_bytes)
    ts_cap = (S // 2 if (B == 1 and S >= 2) else S)            # >=2 steps for megacore
    TS = _pick_tile(S, max(1, avail // (2 * row_b)), quantum=1, cap=ts_cap)

    def _a_index(b, s):
        return (b, 0, 0, 0)

    # The a block is revisited across the s axis; single-buffer it when large
    # (v7x 64 MiB hazard).  At small shapes keep the plain spec.
    a_spec = pl.BlockSpec((1, H, N, N), _a_index)
    if 2 * a_bytes > budget // 8 and hasattr(pl, "Buffered"):
        try:
            a_spec = pl.BlockSpec((1, H, N, N), _a_index,
                                  pipeline_mode=pl.Buffered(1))
        except Exception:
            a_spec = pl.BlockSpec((1, H, N, N), _a_index)

    out = pl.pallas_call(
        functools.partial(_msa_avg_kernel, no_heads=H, c_hidden=c),
        out_shape=jax.ShapeDtypeStruct((B, S, N, Cm), m.dtype),
        grid_spec=pltpu.PrefetchScalarGridSpec(
            num_scalar_prefetch=0,
            grid=(B, S // TS),
            in_specs=[
                pl.BlockSpec((1, TS, N, Cm), lambda b, s: (b, s, 0, 0)),   # m
                a_spec,                                                    # cached a^T
                pl.BlockSpec((1, Cm), lambda b, s: (0, 0)),                # ln_m weight
                pl.BlockSpec((1, Cm), lambda b, s: (0, 0)),                # ln_m bias
                pl.BlockSpec((Cm, 2 * Hc), lambda b, s: (0, 0)),           # fused v|g
                pl.BlockSpec((Hc, Cm), lambda b, s: (0, 0)),               # out proj
            ],
            out_specs=pl.BlockSpec((1, TS, N, Cm), lambda b, s: (b, s, 0, 0)),
        ),
        compiler_params=_CompilerParams(
            dimension_semantics=("parallel", "parallel"),
            vmem_limit_bytes=budget),
    )(m, a_t, lnm_w, lnm_b, wvg, wo)
    return out


# ---------------------------------------------------------------------------
# Pure-JAX reference (PyTorch forward semantics) for checking
# ---------------------------------------------------------------------------
def reference(m, z, mask, params, no_heads, c_hidden):
    B, S, N, Cm = m.shape
    H, c = no_heads, c_hidden
    m_ln = _layer_norm(m, params['lnm_w'][0], params['lnm_b'][0])
    z_ln = _layer_norm(z, params['lnz_w'][0], params['lnz_b'][0])
    b_pair = jnp.einsum('bijc,ch->bhij', z_ln, params['wz'])          # [B,H,N,N]
    mask_max = jnp.max(mask, axis=-2)                                 # [B,N]
    mask_bias = INF * (mask_max - 1.0)
    a = jax.nn.softmax(b_pair + mask_bias[:, None, None, :], axis=-1)
    v = jnp.einsum('bsnc,cd->bsnd', m_ln, params['wv']).reshape(B, S, N, H, c)
    g = jax.nn.sigmoid(
        jnp.einsum('bsnc,cd->bsnd', m_ln, params['wg'])).reshape(B, S, N, H, c)
    o = jnp.einsum('bhij,bsjhc->bsihc', a, v)
    og = (o * g).reshape(B, S, N, H * c)
    return jnp.einsum('bsnd,dc->bsnc', og, params['wo'])


if __name__ == "__main__":
    # Small synthetic shapes consistent with the module.
    B, S, N = 2, 8, 16          # batch, N_msa, N_token
    C_m, C_z = 32, 16           # MSA / pair channels
    H, c_h = 8, 8               # heads, per-head hidden

    key = jax.random.PRNGKey(0)
    ks = jax.random.split(key, 10)

    m = jax.random.normal(ks[0], (B, S, N, C_m), jnp.float32)
    z = jax.random.normal(ks[1], (B, N, N, C_z), jnp.float32)
    mask = jnp.ones((B, S, N), jnp.float32)
    mask = mask.at[1, :, -3:].set(0.0)   # mask out last 3 tokens of batch 1

    scale = 0.1
    params = {
        'lnm_w': 1.0 + 0.05 * jax.random.normal(ks[2], (1, C_m), jnp.float32),
        'lnm_b': 0.05 * jax.random.normal(ks[3], (1, C_m), jnp.float32),
        'lnz_w': 1.0 + 0.05 * jax.random.normal(ks[4], (1, C_z), jnp.float32),
        'lnz_b': 0.05 * jax.random.normal(ks[5], (1, C_z), jnp.float32),
        'wz': scale * jax.random.normal(ks[6], (C_z, H), jnp.float32),
        'wv': scale * jax.random.normal(ks[7], (C_m, H * c_h), jnp.float32),
        'wg': scale * jax.random.normal(ks[8], (C_m, H * c_h), jnp.float32),
        'wo': scale * jax.random.normal(ks[9], (H * c_h, C_m), jnp.float32),
    }

    out = msa_pair_weighted_averaging(m, z, mask, params, H, c_h)
    out = jax.block_until_ready(out)

    ref = reference(m, z, mask, params, H, c_h)
    assert out.shape == (B, S, N, C_m)
    max_err = float(jnp.max(jnp.abs(out - ref)))
    assert jnp.allclose(out, ref, atol=2e-3, rtol=2e-3), (
        f"kernel/reference mismatch (max abs err {max_err})")

    # TODO(synk): chunk_size / chunk_layer and the deepspeed-evo-attention path are
    # framework plumbing, not kernel math; only the default (unchunked) path is implemented.
    print("KERNEL_OK")
</pallas_src>

<mosaic_0001>
module attributes {stable_mosaic.version = 11 : i64} {
  func.func @_attn_weights_kernel(%arg0: i32, %arg1: i32, %arg2: memref<1x1x16xf32, #tpu.memory_space<vmem>>, %arg3: memref<1x16x16x16xf32, #tpu.memory_space<vmem>>, %arg4: memref<16x8xf32, #tpu.memory_space<vmem>>, %arg5: memref<1x16x8x16xf32, #tpu.memory_space<vmem>>) attributes {dimension_semantics = [#tpu.dimension_semantics<parallel>, #tpu.dimension_semantics<parallel>], iteration_bounds = array<i64: 2, 1>, scalar_prefetch = 0 : i64, scratch_operands = 0 : i64, tpu.core_type = #tpu.core_type<tc>, window_params = [{transform_indices = @transform_0, window_bounds = array<i64: 1, 1, 16>}, {transform_indices = @transform_1, window_bounds = array<i64: 1, 16, 16, 16>}, {pipeline_mode = #tpu.pipeline_mode<synchronous>, transform_indices = @transform_2, window_bounds = array<i64: 16, 8>}, {transform_indices = @transform_3, window_bounds = array<i64: 1, 16, 8, 16>}]} {
    %c0 = arith.constant 0 : index
    %c0_0 = arith.constant 0 : index
    %c0_1 = arith.constant 0 : index
    %c0_2 = arith.constant 0 : index
    %0 = vector.load %arg3[%c0, %c0_0, %c0_1, %c0_2] : memref<1x16x16x16xf32, #tpu.memory_space<vmem>>, vector<1x16x16x16xf32>
    %1 = vector.shape_cast %0 : vector<1x16x16x16xf32> to vector<16x16x16xf32>
    %2 = vector.shape_cast %1 : vector<16x16x16xf32> to vector<256x16xf32>
    %cst = arith.constant dense<0.000000e+00> : vector<256xf32>
    %3 = vector.multi_reduction <add>, %2, %cst [1] : vector<256x16xf32> to vector<256xf32>
    %4 = vector.shape_cast %3 : vector<256xf32> to vector<256x1xf32>
    %cst_3 = arith.constant 1.600000e+01 : f32
    %5 = vector.broadcast %cst_3 : f32 to vector<256x1xf32>
    %6 = arith.divf %4, %5 : vector<256x1xf32>
    %7 = vector.broadcast %6 : vector<256x1xf32> to vector<256x16xf32>
    %8 = arith.subf %2, %7 : vector<256x16xf32>
    %9 = arith.mulf %8, %8 : vector<256x16xf32>
    %cst_4 = arith.constant dense<0.000000e+00> : vector<256xf32>
    %10 = vector.multi_reduction <add>, %9, %cst_4 [1] : vector<256x16xf32> to vector<256xf32>
    %11 = vector.shape_cast %10 : vector<256xf32> to vector<256x1xf32>
    %cst_5 = arith.constant 1.600000e+01 : f32
    %12 = vector.broadcast %cst_5 : f32 to vector<256x1xf32>
    %13 = arith.divf %11, %12 : vector<256x1xf32>
    %14 = vector.broadcast %6 : vector<256x1xf32> to vector<256x16xf32>
    %15 = arith.subf %2, %14 : vector<256x16xf32>
    %cst_6 = arith.constant 9.99999974E-6 : f32
    %16 = vector.broadcast %cst_6 : f32 to vector<256x1xf32>
    %17 = arith.addf %13, %16 : vector<256x1xf32>
    %18 = math.rsqrt %17 : vector<256x1xf32>
    %19 = vector.broadcast %18 : vector<256x1xf32> to vector<256x16xf32>
    %20 = arith.mulf %15, %19 : vector<256x16xf32>
    %c0_7 = arith.constant 0 : index
    %c0_8 = arith.constant 0 : index
    %21 = vector.load %arg4[%c0_7, %c0_8] : memref<16x8xf32, #tpu.memory_space<vmem>>, vector<16x8xf32>
    %cst_9 = arith.constant dense<0.000000e+00> : vector<256x8xf32>
    %22 = tpu.matmul %20, %21, %cst_9 {dimension_numbers = #tpu.dot_dimension_numbers<[1], [0], [0], [1], [0, 0, 1, 1], [], []>} : vector<256x16xf32>, vector<16x8xf32>, vector<256x8xf32> -> vector<256x8xf32>
    %23 = vector.shape_cast %22 : vector<256x8xf32> to vector<16x16x8xf32>
    %24 = tpu.transpose %23, [0, 2, 1] : vector<16x16x8xf32> -> vector<16x8x16xf32>
    %c0_10 = arith.constant 0 : index
    %c0_11 = arith.constant 0 : index
    %c0_12 = arith.constant 0 : index
    %25 = vector.load %arg2[%c0_10, %c0_11, %c0_12] : memref<1x1x16xf32, #tpu.memory_space<vmem>>, vector<1x1x16xf32>
    %26 = vector.shape_cast %25 : vector<1x1x16xf32> to vector<1x16xf32>
    %27 = vector.shape_cast %26 : vector<1x16xf32> to vector<1x1x16xf32>
    %28 = vector.broadcast %27 : vector<1x1x16xf32> to vector<16x8x16xf32>
    %29 = arith.addf %24, %28 : vector<16x8x16xf32>
    %cst_13 = arith.constant dense<0xFF800000> : vector<16x8xf32>
    %30 = vector.multi_reduction <maximumf>, %29, %cst_13 [2] : vector<16x8x16xf32> to vector<16x8xf32>
    %31 = vector.shape_cast %30 : vector<16x8xf32> to vector<16x8x1xf32>
    %32 = vector.broadcast %31 : vector<16x8x1xf32> to vector<16x8x16xf32>
    %33 = arith.subf %29, %32 : vector<16x8x16xf32>
    %34 = math.exp %33 : vector<16x8x16xf32>
    %cst_14 = arith.constant dense<0.000000e+00> : vector<16x8xf32>
    %35 = vector.multi_reduction <add>, %34, %cst_14 [2] : vector<16x8x16xf32> to vector<16x8xf32>
    %36 = vector.shape_cast %35 : vector<16x8xf32> to vector<16x8x1xf32>
    %37 = tpu.reciprocal %36 {approx = true} : vector<16x8x1xf32> -> vector<16x8x1xf32>
    %38 = vector.broadcast %37 : vector<16x8x1xf32> to vector<16x8x16xf32>
    %39 = arith.mulf %34, %38 : vector<16x8x16xf32>
    %c0_15 = arith.constant 0 : index
    %c0_16 = arith.constant 0 : index
    %c0_17 = arith.constant 0 : index
    %c0_18 = arith.constant 0 : index
    %40 = vector.load %arg5[%c0_15, %c0_16, %c0_17, %c0_18] : memref<1x16x8x16xf32, #tpu.memory_space<vmem>>, vector<1x16x8x16xf32>
    %41 = vector.shape_cast %40 : vector<1x16x8x16xf32> to vector<16x8x16xf32>
    %42 = vector.shape_cast %39 : vector<16x8x16xf32> to vector<1x16x8x16xf32>
    tpu.vector_store %arg5[%c0_15, %c0_16, %c0_17, %c0_18], %42 {strides = array<i32>} : memref<1x16x8x16xf32, #tpu.memory_space<vmem>>, vector<1x16x8x16xf32>,
    return
  }
  func.func @transform_0(%arg0: i32, %arg1: i32) -> (i32, i32, i32) {
    %c0_i32 = arith.constant 0 : i32
    %c0_i32_0 = arith.constant 0 : i32
    %c0_i32_1 = arith.constant 0 : i32
    return %arg0, %c0_i32, %c0_i32_0 : i32, i32, i32
  }
  func.func @transform_1(%arg0: i32, %arg1: i32) -> (i32, i32, i32, i32) {
    %c0_i32 = arith.constant 0 : i32
    %c0_i32_0 = arith.constant 0 : i32
    %c0_i32_1 = arith.constant 0 : i32
    return %arg0, %arg1, %c0_i32, %c0_i32_0 : i32, i32, i32, i32
  }
  func.func @transform_2(%arg0: i32, %arg1: i32) -> (i32, i32) {
    %c0_i32 = arith.constant 0 : i32
    %c0_i32_0 = arith.constant 0 : i32
    %c0_i32_1 = arith.constant 0 : i32
    return %c0_i32, %c0_i32_0 : i32, i32
  }
  func.func @transform_3(%arg0: i32, %arg1: i32) -> (i32, i32, i32, i32) {
    %c0_i32 = arith.constant 0 : i32
    %c0_i32_0 = arith.constant 0 : i32
    %c0_i32_1 = arith.constant 0 : i32
    return %arg0, %arg1, %c0_i32, %c0_i32_0 : i32, i32, i32, i32
  }
}

</mosaic_0001>

<bundles_post_ra>
// kernel: tpu_custom_call.1
= control target key start
LH: loop header
LB: loop body
LE: loop exit
PB: predicated region body
PF: predicated region fallthrough
CT: control target
= control target key end

     0   :  { %8 = vsyncpa [#allocation3], 0  ;;  %s3078_s0 = inlined_call_operand.vmem [shape: f32[2,1,16], index: 0, kind: input, shape index: {}]   ;;  %s3079_s1 = inlined_call_operand.hbm [shape: f32[2,16,16,16], index: 1, kind: input, shape index: {}]   ;;  %s3080_s2 = inlined_call_operand.vmem [shape: f32[16,8], index: 2, kind: input, shape index: {}]   ;;  %s3081_s3 = inlined_call_operand.hbm [shape: f32[2,16,8,16], index: 3, kind: output, shape index: {}]  }
   0x1   :  { %10 = vsyncpa [#allocation3 + $0x1], 0 }
   0x2   :  { %11 = vsyncpa [#allocation4], 0 }
   0x3   :  { %13 = vsyncpa [#allocation4 + $0x1], 0  ;;  %s2307_s12 = smov 0   ;;  %s2309_s13 = smov 0  }
   0x4   :  { %s2311_s14 = smov 0   ;;  %s2313_s15 = smov 0  }
   0x5   :  { %s2315_s16 = smov 0   ;;  %s2317_s17 = smov 0  }
   0x6 LB: > { %s1836_s18 = sadd.s32 4294967295, %s2279_s17   ;;  %s1837_s19 = sadd.s32 4294967294, %s2279_s17   ;;  %s2279_s17 = sphi %s2317_s17, %s19_s17   ;;  %s2275_s16 = sphi %s2315_s16, %s3092_s16   ;;  %s2271_s15 = sphi %s2313_s15, %s3091_s15   ;;  %s2267_s14 = sphi %s2311_s14, %s3090_s14   ;;  %s2263_s13 = sphi %s2309_s13, %s3089_s13   ;;  %s2259_s12 = sphi %s2307_s12, %s3088_s12  }
   0x7   : > { %s31_s20 = sadd.s32 1, %s2275_s16  ;;  %s66_s21 = sadd.s32 1, %s2267_s14 }
   0x8   : > { %p33_p0 = scmp.ge.s32.totalorder %s31_s20, 2  ;;  %p73_p1 = scmp.ne.s32.totalorder %s2267_s14, %s2263_s13 }
   0x9   : > { %p74_p2 = scmp.eq.s32.totalorder %s2279_s17, 0  ;;  %p79_p3 = scmp.ne.s32.totalorder %s2263_s13, %s2259_s12 }
   0xa   : > { %s3094_s20 = smov (%p33_p0, %s31_s20), 0  ;;  %p80_p5 = scmp.eq.s32.totalorder %s1836_s18, 0 }
   0xb   : > { %p2348_p4 = por %p74_p2, %p73_p1  ;;  %s61_s23 = ssub.s32 %s2275_s16, %s3094_s20 }
   0xc   : > { %p126_p6 = scmp.eq.s32.totalorder %s1836_s18, 1  ;;  %p64_p7 = scmp.eq.s32.totalorder %s61_s23, 0 }
   0xd   : > { %p2354_p8 = por %p80_p5, %p79_p3  ;;  %p132_p10 = scmp.eq.s32.totalorder %s1837_s19, 1 }
   0xe   : > { %p2358_p9 = por %p126_p6, %p73_p1  ;;  %p1988_p13 = scmp.lt.s32.totalorder %s2279_s17, 2 }
   0xf   : > { %s2363_s26 = scalar_select %p64_p7, %s2267_s14, %s66_s21  }
  0x10   : > { %p2365_p11 = por %p132_p10, %p79_p3  ;;  %s161_s28 = sand.u32 1, %s2267_s14  }
  0x11   : > { %s1840_s29 = sshll.u32 %s161_s28, 8  ;;  %s1884_s30 = sshll.u32 %s2275_s16, 12 }
  0x12   : > { %s174_s6 = scalar_lea.hbm %s3079_s1, %s1884_s30  ;;  %s165_s7 = scalar_lea.vmem [#allocation2], %s1840_s29 }
  0x13   : > { %s175_s8 = sshll.u32 %s165_s7, 4  ;;  %p2378_p0 = pnand %p1988_p13, %p2348_p4  ;;  %s176_s8 = int_to_ptr.vmem [resolvable:$true] %s175_s8 }
  0x14   : > { %p1843_p1 = scmp.ge.s32.totalorder %s2279_s17, 1  ;;  %s162_s10 = scalar_lea.sflag [#allocation3], %s161_s28 }
  0x15   : > { %p2173_p2 = pneg %p2378_p0  ;;  %s2184_s11 = scalar_lea.vmem %s176_s8, 4096 }
  0x16   : > { %p2185_p3 = scmp.ne.s32.totalorder %s176_s8, %s2184_s11  ;;  %s2281_s18 = smov [#allocation2]  }
  0x17   : > { %s2189_s19 = sshll.u32 %s2281_s18, 4  ;;  %s2190_s19 = int_to_ptr.vmem [resolvable:$false] %s2189_s19 }
  0x18   : > { %p2187_p5 = pnand %p2185_p3, %p2173_p2  ;;  %s2191_s21 = scalar_lea.vmem %s2190_s19, 8192 }
  0x19   : > { %p2192_p7 = scmp.lt.s32.totalorder %s176_s8, %s2190_s19  ;;  %p2193_p10 = scmp.lt.s32.totalorder %s2191_s21, %s2184_s11 }
  0x1a   : > { %p2188_p6 = pneg %p2187_p5 }
  0x1b   : > { %p2194_p12 = por %p2193_p10, %p2192_p7 }
  0x1d   : > { %p2195_p4 = pnand %p2194_p12, %p2188_p6 }
  0x1f   : > { %2198 = shalt.err (!%p2195_p4)
}
  0x20   : > { %s2282_s22 = smov 128   ;;  %s2283_s23 = smov 8  }
  0x21   : > { %1983 = dma.hbm_to_vmem [thread:$0]  (!%p2378_p0), %s174_s6, 4096, %s176_s8, %s162_s10, %s2282_s22, %s2282_s22, %s2283_s23  }
  0x22   : > { %p183_p13 = scmp.lt.s32.totalorder %s2279_s17, 3 }
  0x24   : > { %p184_p2 = pnand %p1843_p1, %p183_p13 }
  0x25   : > { %s2391_s28 = sand.u32 (!%p184_p2), 1, %s2263_s13  }
  0x26   : > { %187 = sbr.rel (%p184_p2) target bundleno = 1066 (0x42a), region = 32  ;;  %s1844_s29 = sshll.u32 (!%p184_p2), %s2391_s28, 8 }
  0x27   : > { %s190_s30 = scalar_lea.sflag (!%p184_p2), [#allocation3], %s2391_s28  ;;  %s2395_s4 = scalar_lea.vmem (!%p184_p2), [#allocation2], %s1844_s29 }
  0x2b   : > { %2250 = dma.done.wait (%p2354_p8), %s190_s30, 4096  }
  0x2c   : > { %2252 = vsyncadd (%p2354_p8), %s190_s30, 4294963200  ;;  %vm256_vm0 = vcmask 130048   ;;  %v2402_v0 = vld [vmem:[%s2395_s4] sm:$0xff]  ;;  %v2405_v1 = vld [vmem:[%s2395_s4 + $0x8] sm:$0xff]  ;;  %p219_p8 = scmp.lt.s32.totalorder %s2271_s15, 1  ;;  %s1845_s18 = sshll.u32 %s2391_s28, 7 }
  0x2d   : > { %v2408_v2 = vld [vmem:[%s2395_s4 + $0x80] sm:$0xff]  ;;  %v257_v3 = vsel %vm256_vm0, %v2402_v0, 0.0  ;;  %v260_v4 = vsel %vm256_vm0, %v2405_v1, 0.0  ;;  %v2415_v5 = vld [vmem:[%s2395_s4 + $0x88] sm:$0xff]  ;;  %v2422_v8 = vld [vmem:[%s2395_s4 + $0x10] sm:$0xff]  ;;  %s2974_s19 = scalar_lea.vmem [#allocation5], %s1845_s18 }
  0x2e   : > { %258 = vadd.xlane.f32.xlu0 %v257_v3  ;;  %261 = vadd.xlane.f32.xlu1 %v260_v4  ;;  %v305_v6 = vsel %vm256_vm0, %v2408_v2, 0.0  ;;  %v308_v7 = vsel %vm256_vm0, %v2415_v5, 0.0  ;;  %v2425_v9 = vld [vmem:[%s2395_s4 + $0x90] sm:$0xff]  ;;  %v263_v10 = vsel %vm256_vm0, %v2422_v8, 0.0  ;;  %v2432_v12 = vld [vmem:[%s2395_s4 + $0x18] sm:$0xff]  ;;  %v2442_v16 = vld [vmem:[%s2395_s4 + $0x20] sm:$0xff] }
  0x2f   : > { %v311_v11 = vsel %vm256_vm0, %v2425_v9, 0.0  ;;  %v2435_v13 = vld [vmem:[%s2395_s4 + $0x98] sm:$0xff]  ;;  %v266_v14 = vsel %vm256_vm0, %v2432_v12, 0.0  ;;  %v2445_v17 = vld [vmem:[%s2395_s4 + $0xa0] sm:$0xff]  ;;  %v269_v18 = vsel %vm256_vm0, %v2442_v16, 0.0  ;;  %v2452_v20 = vld [vmem:[%s2395_s4 + $0x28] sm:$0xff] }
  0x30   : > { %v314_v15 = vsel %vm256_vm0, %v2435_v13, 0.0  ;;  %v317_v19 = vsel %vm256_vm0, %v2445_v17, 0.0  ;;  %v2455_v21 = vld [vmem:[%s2395_s4 + $0xa8] sm:$0xff]  ;;  %v272_v22 = vsel %vm256_vm0, %v2452_v20, 0.0  ;;  %v2462_v24 = vld [vmem:[%s2395_s4 + $0x30] sm:$0xff]  ;;  %v2472_v28 = vld [vmem:[%s2395_s4 + $0x38] sm:$0xff] }
  0x31   : > { %v320_v23 = vsel %vm256_vm0, %v2455_v21, 0.0  ;;  %v2465_v25 = vld [vmem:[%s2395_s4 + $0xb0] sm:$0xff]  ;;  %v275_v26 = vsel %vm256_vm0, %v2462_v24, 0.0  ;;  %v2475_v29 = vld [vmem:[%s2395_s4 + $0xb8] sm:$0xff]  ;;  %v278_v30 = vsel %vm256_vm0, %v2472_v28, 0.0  ;;  %v2482_v32 = vld [vmem:[%s2395_s4 + $0x40] sm:$0xff] }
  0x32   : > { %306 = vadd.xlane.f32.xlu0 %v305_v6  ;;  %309 = vadd.xlane.f32.xlu1 %v308_v7  ;;  %v323_v27 = vsel %vm256_vm0, %v2465_v25, 0.0  ;;  %v326_v31 = vsel %vm256_vm0, %v2475_v29, 0.0  ;;  %v2485_v33 = vld [vmem:[%s2395_s4 + $0xc0] sm:$0xff]  ;;  %v281_v34 = vsel %vm256_vm0, %v2482_v32, 0.0  ;;  %v2492_v36 = vld [vmem:[%s2395_s4 + $0x48] sm:$0xff]  ;;  %v2502_v40 = vld [vmem:[%s2395_s4 + $0x50] sm:$0xff] }
  0x33   : > { %v329_v35 = vsel %vm256_vm0, %v2485_v33, 0.0  ;;  %v2495_v37 = vld [vmem:[%s2395_s4 + $0xc8] sm:$0xff]  ;;  %v284_v38 = vsel %vm256_vm0, %v2492_v36, 0.0  ;;  %v2505_v41 = vld [vmem:[%s2395_s4 + $0xd0] sm:$0xff]  ;;  %v287_v42 = vsel %vm256_vm0, %v2502_v40, 0.0  ;;  %v2512_v44 = vld [vmem:[%s2395_s4 + $0x58] sm:$0xff] }
  0x34   : > { %v332_v39 = vsel %vm256_vm0, %v2495_v37, 0.0  ;;  %v335_v43 = vsel %vm256_vm0, %v2505_v41, 0.0  ;;  %v2515_v45 = vld [vmem:[%s2395_s4 + $0xd8] sm:$0xff]  ;;  %v290_v46 = vsel %vm256_vm0, %v2512_v44, 0.0  ;;  %v2522_v48 = vld [vmem:[%s2395_s4 + $0x60] sm:$0xff]  ;;  %v2532_v52 = vld [vmem:[%s2395_s4 + $0x68] sm:$0xff] }
  0x35   : > { %v338_v47 = vsel %vm256_vm0, %v2515_v45, 0.0  ;;  %v2525_v49 = vld [vmem:[%s2395_s4 + $0xe0] sm:$0xff]  ;;  %v293_v50 = vsel %vm256_vm0, %v2522_v48, 0.0  ;;  %v2535_v53 = vld [vmem:[%s2395_s4 + $0xe8] sm:$0xff]  ;;  %v296_v54 = vsel %vm256_vm0, %v2532_v52, 0.0  ;;  %v2542_v56 = vld [vmem:[%s2395_s4 + $0x70] sm:$0xff] }
  0x36   : > { %264 = vadd.xlane.f32.xlu0 %v263_v10  ;;  %312 = vadd.xlane.f32.xlu1 %v311_v11  ;;  %v341_v51 = vsel %vm256_vm0, %v2525_v49, 0.0  ;;  %v344_v55 = vsel %vm256_vm0, %v2535_v53, 0.0  ;;  %v2545_v57 = vld [vmem:[%s2395_s4 + $0xf0] sm:$0xff]  ;;  %v299_v58 = vsel %vm256_vm0, %v2542_v56, 0.0  ;;  %v2552_v60 = vld [vmem:[%s2395_s4 + $0x78] sm:$0xff]  ;;  %s220_s8 = scalar_select %p219_p8, %s2271_s15, 1 }
  0x37   : > { %v347_v59 = vsel %vm256_vm0, %v2545_v57, 0.0  ;;  %v2555_v61 = vld [vmem:[%s2395_s4 + $0xf8] sm:$0xff]  ;;  %v302_v62 = vsel %vm256_vm0, %v2552_v60, 0.0  ;;  %s1885_s21 = sshll.u32 %s2271_s15, 11  ;;  %s1740_s22 = sshll.u32 %s2974_s19, 4  ;;  %s3027_s22 = int_to_ptr.vmem [resolvable:$true] %s1740_s22 }
  0x38   : > { %v350_v63 = vsel %vm256_vm0, %v2555_v61, 0.0  ;;  %s221_s11 = scalar_lea.vmem %s3078_s0, %s220_s8  ;;  %s3025_s30 = scalar_lea.hbm %s3081_s3, %s1885_s21 }
  0x39   : > { %s1725_s4 = scalar_lea.sflag [#allocation4], %s2391_s28  ;;  %s2199_s24 = scalar_lea.vmem %s3027_s22, 2048 }
  0x3a   : > { %267 = vadd.xlane.f32.xlu0 %v266_v14  ;;  %315 = vadd.xlane.f32.xlu1 %v314_v15  ;;  %p2200_p12 = scmp.ne.s32.totalorder %s3027_s22, %s2199_s24  ;;  %s2284_s15 = smov [#allocation5]  }
  0x3b   : > { %s2203_s5 = sshll.u32 %s2284_s15, 4  ;;  %s2204_s5 = int_to_ptr.vmem [resolvable:$false] %s2203_s5 }
  0x3c   : > { %p2201_p0 = pnand %p2200_p12, %p2358_p9  ;;  %s2205_s6 = scalar_lea.vmem %s2204_s5, 4096 }
  0x3d   : > { %p2206_p3 = scmp.lt.s32.totalorder %s3027_s22, %s2204_s5  ;;  %p2207_p5 = scmp.lt.s32.totalorder %s2205_s6, %s2199_s24 }
  0x3e   : > { %270 = vadd.xlane.f32.xlu0 %v269_v18  ;;  %318 = vadd.xlane.f32.xlu1 %v317_v19  ;;  %p2202_p1 = pneg %p2201_p0 }
  0x3f   : > { %p2208_p6 = por %p2207_p5, %p2206_p3 }
  0x41   : > { %p2209_p7 = pnand %p2208_p6, %p2202_p1 }
  0x42   : > { %273 = vadd.xlane.f32.xlu0 %v272_v22  ;;  %321 = vadd.xlane.f32.xlu1 %v320_v23 }
  0x46   : > { %276 = vadd.xlane.f32.xlu0 %v275_v26  ;;  %324 = vadd.xlane.f32.xlu1 %v323_v27 }
  0x4a   : > { %279 = vadd.xlane.f32.xlu0 %v278_v30  ;;  %327 = vadd.xlane.f32.xlu1 %v326_v31 }
  0x4e   : > { %282 = vadd.xlane.f32.xlu0 %v281_v34  ;;  %330 = vadd.xlane.f32.xlu1 %v329_v35 }
  0x52   : > { %285 = vadd.xlane.f32.xlu0 %v284_v38  ;;  %333 = vadd.xlane.f32.xlu1 %v332_v39 }
  0x56   : > { %288 = vadd.xlane.f32.xlu0 %v287_v42  ;;  %336 = vadd.xlane.f32.xlu1 %v335_v43 }
  0x5a   : > { %291 = vadd.xlane.f32.xlu0 %v290_v46  ;;  %339 = vadd.xlane.f32.xlu1 %v338_v47 }
  0x5e   : > { %294 = vadd.xlane.f32.xlu0 %v293_v50  ;;  %342 = vadd.xlane.f32.xlu1 %v341_v51 }
  0x62   : > { %297 = vadd.xlane.f32.xlu0 %v296_v54  ;;  %345 = vadd.xlane.f32.xlu1 %v344_v55 }
  0x66   : > { %300 = vadd.xlane.f32.xlu0 %v299_v58  ;;  %348 = vadd.xlane.f32.xlu1 %v347_v59 }
  0x6a   : > { %303 = vadd.xlane.f32.xlu0 %v302_v62  ;;  %351 = vadd.xlane.f32.xlu1 %v350_v63 }
  0xb7   : > { %v259_v3 = vpop.xlane.xlu0 %258  ;;  %v262_v4 = vpop.xlane.xlu1 %261 }
  0xb8   : > { %v354_v6 = vmul.f32 0.0625, %v259_v3  ;;  %v355_v7 = vmul.f32 0.0625, %v262_v4 }
  0xba   : > { %v2562_v10 = vsub.f32 %v2402_v0, %v354_v6  ;;  %v2565_v11 = vsub.f32 %v2405_v1, %v355_v7 }
  0xbb   : > { %v307_v14 = vpop.xlane.xlu0 %306  ;;  %v310_v15 = vpop.xlane.xlu1 %309 }
  0xbc   : > { %v370_v18 = vmul.f32 0.0625, %v307_v14  ;;  %v371_v19 = vmul.f32 0.0625, %v310_v15  ;;  %v418_v22 = vmul.f32 %v2562_v10, %v2562_v10  ;;  %v419_v23 = vmul.f32 %v2565_v11, %v2565_v11 }
  0xbe   : > { %v2572_v26 = vsub.f32 %v2408_v2, %v370_v18  ;;  %v2575_v27 = vsub.f32 %v2415_v5, %v371_v19  ;;  %v450_v0 = vsel %vm256_vm0, %v418_v22, 0.0  ;;  %v453_v31 = vsel %vm256_vm0, %v419_v23, 0.0 }
  0xbf   : > { %451 = vadd.xlane.f32.xlu0 %v450_v0  ;;  %v265_v1 = vpop.xlane.xlu0 %264  ;;  %v313_v30 = vpop.xlane.xlu1 %312 }
  0xc0   : > { %v356_v34 = vmul.f32 0.0625, %v265_v1  ;;  %v372_v35 = vmul.f32 0.0625, %v313_v30  ;;  %v434_v38 = vmul.f32 %v2572_v26, %v2572_v26  ;;  %v435_v39 = vmul.f32 %v2575_v27, %v2575_v27 }
  0xc2   : > { %v2584_v2 = vsub.f32 %v2422_v8, %v356_v34  ;;  %v2587_v5 = vsub.f32 %v2425_v9, %v372_v35  ;;  %v498_v42 = vsel %vm256_vm0, %v434_v38, 0.0  ;;  %v501_v47 = vsel %vm256_vm0, %v435_v39, 0.0 }
  0xc3   : > { %454 = vadd.xlane.f32.xlu0 %v453_v31  ;;  %499 = vadd.xlane.f32.xlu1 %v498_v42  ;;  %v268_v43 = vpop.xlane.xlu0 %267  ;;  %v316_v46 = vpop.xlane.xlu1 %315 }
  0xc4   : > { %v357_v50 = vmul.f32 0.0625, %v268_v43  ;;  %v373_v51 = vmul.f32 0.0625, %v316_v46  ;;  %v420_v54 = vmul.f32 %v2584_v2, %v2584_v2  ;;  %v436_v8 = vmul.f32 %v2587_v5, %v2587_v5 }
  0xc6   : > { %v2596_v55 = vsub.f32 %v2432_v12, %v357_v50  ;;  %v2599_v9 = vsub.f32 %v2435_v13, %v373_v51  ;;  %v456_v58 = vsel %vm256_vm0, %v420_v54, 0.0  ;;  %v504_v63 = vsel %vm256_vm0, %v436_v8, 0.0 }
  0xc7   : > { %502 = vadd.xlane.f32.xlu1 %v501_v47  ;;  %457 = vadd.xlane.f32.xlu0 %v456_v58  ;;  %v271_v59 = vpop.xlane.xlu0 %270  ;;  %v319_v62 = vpop.xlane.xlu1 %318 }
  0xc8   : > { %v358_v3 = vmul.f32 0.0625, %v271_v59  ;;  %v374_v4 = vmul.f32 0.0625, %v319_v62  ;;  %v421_v6 = vmul.f32 %v2596_v55, %v2596_v55  ;;  %v437_v12 = vmul.f32 %v2599_v9, %v2599_v9 }
  0xca   : > { %v2608_v7 = vsub.f32 %v2442_v16, %v358_v3  ;;  %v2611_v13 = vsub.f32 %v2445_v17, %v374_v4  ;;  %v459_v14 = vsel %vm256_vm0, %v421_v6, 0.0  ;;  %v507_v19 = vsel %vm256_vm0, %v437_v12, 0.0 }
  0xcb   : > { %505 = vadd.xlane.f32.xlu1 %v504_v63  ;;  %460 = vadd.xlane.f32.xlu0 %v459_v14  ;;  %v274_v15 = vpop.xlane.xlu0 %273  ;;  %v322_v18 = vpop.xlane.xlu1 %321 }
  0xcc   : > { %v359_v22 = vmul.f32 0.0625, %v274_v15  ;;  %v375_v23 = vmul.f32 0.0625, %v322_v18  ;;  %v422_v0 = vmul.f32 %v2608_v7, %v2608_v7  ;;  %v438_v16 = vmul.f32 %v2611_v13, %v2611_v13 }
  0xce   : > { %v2620_v1 = vsub.f32 %v2452_v20, %v359_v22  ;;  %v2623_v17 = vsub.f32 %v2455_v21, %v375_v23  ;;  %v462_v30 = vsel %vm256_vm0, %v422_v0, 0.0  ;;  %v510_v35 = vsel %vm256_vm0, %v438_v16, 0.0 }
  0xcf   : > { %508 = vadd.xlane.f32.xlu1 %v507_v19  ;;  %463 = vadd.xlane.f32.xlu0 %v462_v30  ;;  %v277_v31 = vpop.xlane.xlu0 %276  ;;  %v325_v34 = vpop.xlane.xlu1 %324 }
  0xd0   : > { %v360_v38 = vmul.f32 0.0625, %v277_v31  ;;  %v376_v39 = vmul.f32 0.0625, %v325_v34  ;;  %v423_v42 = vmul.f32 %v2620_v1, %v2620_v1  ;;  %v439_v20 = vmul.f32 %v2623_v17, %v2623_v17 }
  0xd2   : > { %v2632_v43 = vsub.f32 %v2462_v24, %v360_v38  ;;  %v2635_v21 = vsub.f32 %v2465_v25, %v376_v39  ;;  %v465_v46 = vsel %vm256_vm0, %v423_v42, 0.0  ;;  %v513_v51 = vsel %vm256_vm0, %v439_v20, 0.0  ;;  %v674_v20 = vld [vmem:[%s3080_s2] sm:$0xff] }
  0xd3   : > { %511 = vadd.xlane.f32.xlu1 %v510_v35  ;;  %466 = vadd.xlane.f32.xlu0 %v465_v46  ;;  %v280_v47 = vpop.xlane.xlu0 %279  ;;  %v328_v50 = vpop.xlane.xlu1 %327 }
  0xd4   : > { %v361_v54 = vmul.f32 0.0625, %v280_v47  ;;  %v377_v8 = vmul.f32 0.0625, %v328_v50  ;;  %v424_v58 = vmul.f32 %v2632_v43, %v2632_v43  ;;  %v440_v24 = vmul.f32 %v2635_v21, %v2635_v21 }
  0xd6   : > { %v2644_v59 = vsub.f32 %v2472_v28, %v361_v54  ;;  %v2647_v25 = vsub.f32 %v2475_v29, %v377_v8  ;;  %v468_v62 = vsel %vm256_vm0, %v424_v58, 0.0  ;;  %v516_v4 = vsel %vm256_vm0, %v440_v24, 0.0 }
  0xd7   : > { %514 = vadd.xlane.f32.xlu1 %v513_v51  ;;  %469 = vadd.xlane.f32.xlu0 %v468_v62  ;;  %v283_v63 = vpop.xlane.xlu0 %282  ;;  %v331_v3 = vpop.xlane.xlu1 %330 }
  0xd8   : > { %v362_v6 = vmul.f32 0.0625, %v283_v63  ;;  %v378_v12 = vmul.f32 0.0625, %v331_v3  ;;  %v425_v14 = vmul.f32 %v2644_v59, %v2644_v59  ;;  %v441_v28 = vmul.f32 %v2647_v25, %v2647_v25 }
  0xda   : > { %v2656_v15 = vsub.f32 %v2482_v32, %v362_v6  ;;  %v2659_v29 = vsub.f32 %v2485_v33, %v378_v12  ;;  %v471_v18 = vsel %vm256_vm0, %v425_v14, 0.0  ;;  %v519_v23 = vsel %vm256_vm0, %v441_v28, 0.0  ;;  %v675_v33 = vld [vmem:[%s3080_s2 + $0x8] sm:$0xff] }
  0xdb   : > { %517 = vadd.xlane.f32.xlu1 %v516_v4  ;;  %472 = vadd.xlane.f32.xlu0 %v471_v18  ;;  %v286_v19 = vpop.xlane.xlu0 %285  ;;  %v334_v22 = vpop.xlane.xlu1 %333 }
  0xdc   : > { %v363_v0 = vmul.f32 0.0625, %v286_v19  ;;  %v379_v16 = vmul.f32 0.0625, %v334_v22  ;;  %v426_v30 = vmul.f32 %v2656_v15, %v2656_v15  ;;  %v442_v32 = vmul.f32 %v2659_v29, %v2659_v29  ;;  %1920 = vmatprep.subr.mxu0 %v675_v33  ;;  %1972 = vmatprep.subr.mxu1 %v675_v33 }
  0xdd   : > { %1921 = vmatpush3.msra.mxu0 %v675_v33  ;;  %1974 = vmatpush3.msra.mxu1 %v675_v33 }
  0xde   : > { %v2671_v31 = vsub.f32 %v2492_v36, %v363_v0  ;;  %v2674_v34 = vsub.f32 %v2495_v37, %v379_v16  ;;  %v474_v35 = vsel %vm256_vm0, %v426_v30, 0.0  ;;  %v522_v42 = vsel %vm256_vm0, %v442_v32, 0.0  ;;  %1922 = vmatprep.subr.mxu0 %v674_v20  ;;  %1973 = vmatprep.subr.mxu1 %v674_v20 }
  0xdf   : > { %520 = vadd.xlane.f32.xlu1 %v519_v23  ;;  %475 = vadd.xlane.f32.xlu0 %v474_v35  ;;  %v289_v38 = vpop.xlane.xlu0 %288  ;;  %v337_v39 = vpop.xlane.xlu1 %336 }
  0xe0   : > { %v364_v46 = vmul.f32 0.0625, %v289_v38  ;;  %v380_v36 = vmul.f32 0.0625, %v337_v39  ;;  %v427_v37 = vmul.f32 %v2671_v31, %v2671_v31  ;;  %v443_v47 = vmul.f32 %v2674_v34, %v2674_v34  ;;  %1923 = vmatpush3.msra.mxu0 %v674_v20  ;;  %1975 = vmatpush3.msra.mxu1 %v674_v20 }
  0xe2   : > { %v2686_v50 = vsub.f32 %v2502_v40, %v364_v46  ;;  %v2689_v51 = vsub.f32 %v2505_v41, %v380_v36  ;;  %v477_v54 = vsel %vm256_vm0, %v427_v37, 0.0  ;;  %v525_v24 = vsel %vm256_vm0, %v443_v47, 0.0 }
  0xe3   : > { %523 = vadd.xlane.f32.xlu1 %v522_v42  ;;  %478 = vadd.xlane.f32.xlu0 %v477_v54  ;;  %v292_v8 = vpop.xlane.xlu0 %291  ;;  %v340_v58 = vpop.xlane.xlu1 %339 }
  0xe4   : > { %v365_v62 = vmul.f32 0.0625, %v292_v8  ;;  %v381_v63 = vmul.f32 0.0625, %v340_v58  ;;  %v428_v3 = vmul.f32 %v2686_v50, %v2686_v50  ;;  %v444_v40 = vmul.f32 %v2689_v51, %v2689_v51 }
  0xe6   : > { %v2698_v41 = vsub.f32 %v2512_v44, %v365_v62  ;;  %v2701_v4 = vsub.f32 %v2515_v45, %v381_v63  ;;  %v480_v6 = vsel %vm256_vm0, %v428_v3, 0.0  ;;  %v528_v28 = vsel %vm256_vm0, %v444_v40, 0.0 }
  0xe7   : > { %526 = vadd.xlane.f32.xlu1 %v525_v24  ;;  %481 = vadd.xlane.f32.xlu0 %v480_v6  ;;  %v295_v12 = vpop.xlane.xlu0 %294  ;;  %v343_v14 = vpop.xlane.xlu1 %342 }
  0xe8   : > { %v366_v18 = vmul.f32 0.0625, %v295_v12  ;;  %v382_v19 = vmul.f32 0.0625, %v343_v14  ;;  %v429_v22 = vmul.f32 %v2698_v41, %v2698_v41  ;;  %v445_v44 = vmul.f32 %v2701_v4, %v2701_v4 }
  0xea   : > { %v2710_v23 = vsub.f32 %v2522_v48, %v366_v18  ;;  %v2713_v45 = vsub.f32 %v2525_v49, %v382_v19  ;;  %v483_v0 = vsel %vm256_vm0, %v429_v22, 0.0  ;;  %v531_v32 = vsel %vm256_vm0, %v445_v44, 0.0 }
  0xeb   : > { %529 = vadd.xlane.f32.xlu1 %v528_v28  ;;  %484 = vadd.xlane.f32.xlu0 %v483_v0  ;;  %v298_v16 = vpop.xlane.xlu0 %297  ;;  %v346_v30 = vpop.xlane.xlu1 %345 }
  0xec   : > { %v367_v33 = vmul.f32 0.0625, %v298_v16  ;;  %v383_v35 = vmul.f32 0.0625, %v346_v30  ;;  %v430_v38 = vmul.f32 %v2710_v23, %v2710_v23  ;;  %v446_v48 = vmul.f32 %v2713_v45, %v2713_v45 }
  0xee   : > { %v2722_v39 = vsub.f32 %v2532_v52, %v367_v33  ;;  %v2725_v49 = vsub.f32 %v2535_v53, %v383_v35  ;;  %v486_v42 = vsel %vm256_vm0, %v430_v38, 0.0  ;;  %v534_v36 = vsel %vm256_vm0, %v446_v48, 0.0 }
  0xef   : > { %532 = vadd.xlane.f32.xlu1 %v531_v32  ;;  %487 = vadd.xlane.f32.xlu0 %v486_v42  ;;  %v301_v20 = vpop.xlane.xlu0 %300  ;;  %v349_v46 = vpop.xlane.xlu1 %348 }
  0xf0   : > { %v368_v37 = vmul.f32 0.0625, %v301_v20  ;;  %v384_v47 = vmul.f32 0.0625, %v349_v46  ;;  %v431_v54 = vmul.f32 %v2722_v39, %v2722_v39  ;;  %v447_v52 = vmul.f32 %v2725_v49, %v2725_v49 }
  0xf2   : > { %v2734_v8 = vsub.f32 %v2542_v56, %v368_v37  ;;  %v2737_v53 = vsub.f32 %v2545_v57, %v384_v47  ;;  %v489_v58 = vsel %vm256_vm0, %v431_v54, 0.0  ;;  %v537_v63 = vsel %vm256_vm0, %v447_v52, 0.0 }
  0xf3   : > { %535 = vadd.xlane.f32.xlu1 %v534_v36  ;;  %490 = vadd.xlane.f32.xlu0 %v489_v58  ;;  %v304_v24 = vpop.xlane.xlu0 %303  ;;  %v352_v62 = vpop.xlane.xlu1 %351 }
  0xf4   : > { %v369_v3 = vmul.f32 0.0625, %v304_v24  ;;  %v385_v40 = vmul.f32 0.0625, %v352_v62  ;;  %v432_v6 = vmul.f32 %v2734_v8, %v2734_v8  ;;  %v448_v56 = vmul.f32 %v2737_v53, %v2737_v53 }
  0xf6   : > { %v2746_v12 = vsub.f32 %v2552_v60, %v369_v3  ;;  %v2749_v57 = vsub.f32 %v2555_v61, %v385_v40  ;;  %v492_v14 = vsel %vm256_vm0, %v432_v6, 0.0  ;;  %v540_v28 = vsel %vm256_vm0, %v448_v56, 0.0 }
  0xf7   : > { %538 = vadd.xlane.f32.xlu1 %v537_v63  ;;  %493 = vadd.xlane.f32.xlu0 %v492_v14 }
  0xf8   : > { %v433_v18 = vmul.f32 %v2746_v12, %v2746_v12  ;;  %v449_v19 = vmul.f32 %v2749_v57, %v2749_v57 }
  0xfa   : > { %v495_v22 = vsel %vm256_vm0, %v433_v18, 0.0  ;;  %v543_v60 = vsel %vm256_vm0, %v449_v19, 0.0 }
  0xfb   : > { %541 = vadd.xlane.f32.xlu1 %v540_v28  ;;  %496 = vadd.xlane.f32.xlu0 %v495_v22 }
  0xff   : > { %544 = vadd.xlane.f32.xlu1 %v543_v60 }
 0x148   : > { %v452_v61 = vpop.xlane.xlu0 %451 }
 0x149   : > { %v546_v44 = vmul.f32 0.0625, %v452_v61 }
 0x14b   : > { %v578_v0 = vadd.f32 1e-05, %v546_v44 }
 0x14c   : > { %v500_v16 = vpop.xlane.xlu1 %499  ;;  %v455_v30 = vpop.xlane.xlu0 %454 }
 0x14d   : > { %2043 = vrsqrt.f32 %v578_v0  ;;  %v562_v32 = vmul.f32 0.0625, %v500_v16  ;;  %v547_v33 = vmul.f32 0.0625, %v455_v30 }
 0x14f   : > { %v594_v35 = vadd.f32 1e-05, %v562_v32  ;;  %v579_v38 = vadd.f32 1e-05, %v547_v33 }
 0x150   : > { %v503_v48 = vpop.xlane.xlu1 %502  ;;  %v458_v42 = vpop.xlane.xlu0 %457 }
 0x151   : > { %2045 = vrsqrt.f32 %v594_v35  ;;  %v563_v20 = vmul.f32 0.0625, %v503_v48  ;;  %v548_v46 = vmul.f32 0.0625, %v458_v42 }
 0x152   : > { %2047 = vrsqrt.f32 %v579_v38 }
 0x153   : > { %v595_v36 = vadd.f32 1e-05, %v563_v20  ;;  %v580_v37 = vadd.f32 1e-05, %v548_v46 }
 0x154   : > { %v506_v47 = vpop.xlane.xlu1 %505  ;;  %v461_v54 = vpop.xlane.xlu0 %460 }
 0x155   : > { %2049 = vrsqrt.f32 %v595_v36  ;;  %v564_v52 = vmul.f32 0.0625, %v506_v47  ;;  %v549_v58 = vmul.f32 0.0625, %v461_v54 }
 0x156   : > { %2051 = vrsqrt.f32 %v580_v37 }
 0x157   : > { %v596_v24 = vadd.f32 1e-05, %v564_v52  ;;  %v581_v62 = vadd.f32 1e-05, %v549_v58 }
 0x158   : > { %v509_v63 = vpop.xlane.xlu1 %508  ;;  %v464_v3 = vpop.xlane.xlu0 %463 }
 0x159   : > { %2053 = vrsqrt.f32 %v596_v24  ;;  %v565_v40 = vmul.f32 0.0625, %v509_v63  ;;  %v550_v6 = vmul.f32 0.0625, %v464_v3 }
 0x15a   : > { %v2044_v56 = vpop.eup %2043  ;;  %2055 = vrsqrt.f32 %v581_v62 }
 0x15b   : > { %v597_v14 = vadd.f32 1e-05, %v565_v40  ;;  %v582_v28 = vadd.f32 1e-05, %v550_v6  ;;  %v642_v18 = vmul.f32 %v2044_v56, %v2562_v10 }
 0x15c   : > { %v512_v19 = vpop.xlane.xlu1 %511  ;;  %v467_v22 = vpop.xlane.xlu0 %466 }
 0x15d   : > { %2057 = vrsqrt.f32 %v597_v14  ;;  %v566_v60 = vmul.f32 0.0625, %v512_v19  ;;  %v551_v61 = vmul.f32 0.0625, %v467_v22  ;;  %1924 = vmatprep.mubr.msk.f32.mxu0 %vm256_vm0, %v642_v18 }
 0x15e   : > { %v2046_v44 = vpop.eup %2045  ;;  %2059 = vrsqrt.f32 %v582_v28 }
 0x15f   : > { %v2048_v0 = vpop.eup %2047  ;;  %v598_v16 = vadd.f32 1e-05, %v566_v60  ;;  %v583_v30 = vadd.f32 1e-05, %v551_v61  ;;  %v658_v32 = vmul.f32 %v2046_v44, %v2572_v26 }
 0x160   : > { %v515_v33 = vpop.xlane.xlu1 %514  ;;  %v470_v35 = vpop.xlane.xlu0 %469  ;;  %v643_v38 = vmul.f32 %v2048_v0, %v2565_v11 }
 0x161   : > { %2061 = vrsqrt.f32 %v598_v16  ;;  %v567_v10 = vmul.f32 0.0625, %v515_v33  ;;  %v552_v48 = vmul.f32 0.0625, %v470_v35  ;;  %1948 = vmatprep.mubr.msk.f32.mxu1 %vm256_vm0, %v658_v32 }
 0x162   : > { %v2050_v42 = vpop.eup %2049  ;;  %2063 = vrsqrt.f32 %v583_v30  ;;  %1925 = vmatmul.mubr.msk.f32.vlgmr.msra.gmra.mxu0 %vm256_vm0, %v643_v38 }
 0x163   : > { %v2052_v20 = vpop.eup %2051  ;;  %v599_v46 = vadd.f32 1e-05, %v567_v10  ;;  %v584_v36 = vadd.f32 1e-05, %v552_v48  ;;  %v659_v37 = vmul.f32 %v2050_v42, %v2575_v27 }
 0x164   : > { %v518_v47 = vpop.xlane.xlu1 %517  ;;  %v473_v26 = vpop.xlane.xlu0 %472  ;;  %v644_v54 = vmul.f32 %v2052_v20, %v2584_v2 }
 0x165   : > { %2065 = vrsqrt.f32 %v599_v46  ;;  %v568_v11 = vmul.f32 0.0625, %v518_v47  ;;  %v553_v52 = vmul.f32 0.0625, %v473_v26  ;;  %1949 = vmatmul.mubr.msk.f32.vlgmr.msra.gmra.mxu1 %vm256_vm0, %v659_v37 }
 0x166   : > { %v2054_v58 = vpop.eup %2053  ;;  %2067 = vrsqrt.f32 %v584_v36  ;;  %1927 = vmatprep.mubr.msk.f32.mxu0 %vm256_vm0, %v644_v54 }
 0x167   : > { %v2056_v24 = vpop.eup %2055  ;;  %v600_v62 = vadd.f32 1e-05, %v568_v11  ;;  %v585_v63 = vadd.f32 1e-05, %v553_v52  ;;  %v660_v3 = vmul.f32 %v2054_v58, %v2587_v5 }
 0x168   : > { %v521_v40 = vpop.xlane.xlu1 %520  ;;  %v476_v27 = vpop.xlane.xlu0 %475  ;;  %v645_v6 = vmul.f32 %v2056_v24, %v2596_v55 }
 0x169   : > { %2069 = vrsqrt.f32 %v600_v62  ;;  %v569_v2 = vmul.f32 0.0625, %v521_v40  ;;  %v554_v56 = vmul.f32 0.0625, %v476_v27  ;;  %1951 = vmatprep.mubr.msk.f32.mxu1 %vm256_vm0, %v660_v3 }
 0x16a   : > { %v2058_v14 = vpop.eup %2057  ;;  %2071 = vrsqrt.f32 %v585_v63  ;;  %1928 = vmatmul.mubr.msk.f32.gmra.mxu0 %vm256_vm0, %v645_v6 }
 0x16b   : > { %v2060_v28 = vpop.eup %2059  ;;  %v601_v18 = vadd.f32 1e-05, %v569_v2  ;;  %v586_v19 = vadd.f32 1e-05, %v554_v56  ;;  %v661_v22 = vmul.f32 %v2058_v14, %v2599_v9 }
 0x16c   : > { %v524_v60 = vpop.xlane.xlu1 %523  ;;  %v479_v5 = vpop.xlane.xlu0 %478  ;;  %v646_v61 = vmul.f32 %v2060_v28, %v2608_v7 }
 0x16d   : > { %2073 = vrsqrt.f32 %v601_v18  ;;  %v570_v55 = vmul.f32 0.0625, %v524_v60  ;;  %v555_v44 = vmul.f32 0.0625, %v479_v5  ;;  %1952 = vmatmul.mubr.msk.f32.gmra.mxu1 %vm256_vm0, %v661_v22 }
 0x16e   : > { %v2062_v0 = vpop.eup %2061  ;;  %2075 = vrsqrt.f32 %v586_v19  ;;  %1930 = vmatprep.mubr.msk.f32.mxu0 %vm256_vm0, %v646_v61 }
 0x16f   : > { %v2064_v16 = vpop.eup %2063  ;;  %v602_v30 = vadd.f32 1e-05, %v570_v55  ;;  %v587_v32 = vadd.f32 1e-05, %v555_v44  ;;  %v662_v33 = vmul.f32 %v2062_v0, %v2611_v13 }
 0x170   : > { %v527_v35 = vpop.xlane.xlu1 %526  ;;  %v482_v9 = vpop.xlane.xlu0 %481  ;;  %v647_v38 = vmul.f32 %v2064_v16, %v2620_v1 }
 0x171   : > { %2077 = vrsqrt.f32 %v602_v30  ;;  %v571_v7 = vmul.f32 0.0625, %v527_v35  ;;  %v556_v10 = vmul.f32 0.0625, %v482_v9  ;;  %1954 = vmatprep.mubr.msk.f32.mxu1 %vm256_vm0, %v662_v33 }
 0x172   : > { %v2066_v48 = vpop.eup %2065  ;;  %2079 = vrsqrt.f32 %v587_v32  ;;  %1931 = vmatmul.mubr.msk.f32.gmra.mxu0 %vm256_vm0, %v647_v38 }
 0x173   : > { %v2068_v42 = vpop.eup %2067  ;;  %v603_v20 = vadd.f32 1e-05, %v571_v7  ;;  %v588_v46 = vadd.f32 1e-05, %v556_v10  ;;  %v663_v36 = vmul.f32 %v2066_v48, %v2623_v17 }
 0x174   : > { %v530_v37 = vpop.xlane.xlu1 %529  ;;  %v485_v13 = vpop.xlane.xlu0 %484  ;;  %v648_v47 = vmul.f32 %v2068_v42, %v2632_v43 }
 0x175   : > { %2081 = vrsqrt.f32 %v603_v20  ;;  %v572_v1 = vmul.f32 0.0625, %v530_v37  ;;  %v557_v26 = vmul.f32 0.0625, %v485_v13  ;;  %1955 = vmatmul.mubr.msk.f32.gmra.mxu1 %vm256_vm0, %v663_v36 }
 0x176   : > { %v2070_v54 = vpop.eup %2069  ;;  %2083 = vrsqrt.f32 %v588_v46  ;;  %1933 = vmatprep.mubr.msk.f32.mxu0 %vm256_vm0, %v648_v47 }
 0x177   : > { %v2072_v11 = vpop.eup %2071  ;;  %v604_v52 = vadd.f32 1e-05, %v572_v1  ;;  %v589_v58 = vadd.f32 1e-05, %v557_v26  ;;  %v664_v24 = vmul.f32 %v2070_v54, %v2635_v21 }
 0x178   : > { %v533_v62 = vpop.xlane.xlu1 %532  ;;  %v488_v17 = vpop.xlane.xlu0 %487  ;;  %v649_v63 = vmul.f32 %v2072_v11, %v2644_v59 }
 0x179   : > { %2085 = vrsqrt.f32 %v604_v52  ;;  %v573_v43 = vmul.f32 0.0625, %v533_v62  ;;  %v558_v3 = vmul.f32 0.0625, %v488_v17  ;;  %1957 = vmatprep.mubr.msk.f32.mxu1 %vm256_vm0, %v664_v24 }
 0x17a   : > { %v2074_v40 = vpop.eup %2073  ;;  %2087 = vrsqrt.f32 %v589_v58  ;;  %1934 = vmatmul.mubr.msk.f32.gmra.mxu0 %vm256_vm0, %v649_v63 }
 0x17b   : > { %v2076_v27 = vpop.eup %2075  ;;  %v605_v6 = vadd.f32 1e-05, %v573_v43  ;;  %v590_v2 = vadd.f32 1e-05, %v558_v3  ;;  %v665_v56 = vmul.f32 %v2074_v40, %v2647_v25 }
 0x17c   : > { %v536_v14 = vpop.xlane.xlu1 %535  ;;  %v491_v21 = vpop.xlane.xlu0 %490  ;;  %v650_v28 = vmul.f32 %v2076_v27, %v2656_v15 }
 0x17d   : > { %2089 = vrsqrt.f32 %v605_v6  ;;  %v574_v59 = vmul.f32 0.0625, %v536_v14  ;;  %v559_v18 = vmul.f32 0.0625, %v491_v21  ;;  %1958 = vmatmul.mubr.msk.f32.gmra.mxu1 %vm256_vm0, %v665_v56 }
 0x17e   : > { %v2078_v19 = vpop.eup %2077  ;;  %2091 = vrsqrt.f32 %v590_v2  ;;  %1936 = vmatprep.mubr.msk.f32.mxu0 %vm256_vm0, %v650_v28 }
 0x17f   : > { %v2080_v22 = vpop.eup %2079  ;;  %v606_v60 = vadd.f32 1e-05, %v574_v59  ;;  %v591_v5 = vadd.f32 1e-05, %v559_v18  ;;  %v666_v61 = vmul.f32 %v2078_v19, %v2659_v29 }
 0x180   : > { %v539_v55 = vpop.xlane.xlu1 %538  ;;  %v494_v25 = vpop.xlane.xlu0 %493  ;;  %v651_v44 = vmul.f32 %v2080_v22, %v2671_v31 }
 0x181   : > { %2093 = vrsqrt.f32 %v606_v60  ;;  %v575_v15 = vmul.f32 0.0625, %v539_v55  ;;  %v560_v0 = vmul.f32 0.0625, %v494_v25  ;;  %1960 = vmatprep.mubr.msk.f32.mxu1 %vm256_vm0, %v666_v61 }
 0x182   : > { %v2082_v16 = vpop.eup %2081  ;;  %2095 = vrsqrt.f32 %v591_v5  ;;  %1937 = vmatmul.mubr.msk.f32.gmra.mxu0 %vm256_vm0, %v651_v44 }
 0x183   : > { %v2084_v30 = vpop.eup %2083  ;;  %v607_v32 = vadd.f32 1e-05, %v575_v15  ;;  %v592_v33 = vadd.f32 1e-05, %v560_v0  ;;  %v667_v35 = vmul.f32 %v2082_v16, %v2674_v34 }
 0x184   : > { %v542_v9 = vpop.xlane.xlu1 %541  ;;  %v497_v29 = vpop.xlane.xlu0 %496  ;;  %v652_v38 = vmul.f32 %v2084_v30, %v2686_v50 }
 0x185   : > { %2097 = vrsqrt.f32 %v607_v32  ;;  %v576_v31 = vmul.f32 0.0625, %v542_v9  ;;  %v561_v7 = vmul.f32 0.0625, %v497_v29  ;;  %1961 = vmatmul.mubr.msk.f32.gmra.mxu1 %vm256_vm0, %v667_v35  ;;  %v1878_v9 = vld [vmem:[%s221_s11] ss:$0 sm:$0xff] }
 0x186   : > { %v2086_v10 = vpop.eup %2085  ;;  %2099 = vrsqrt.f32 %v592_v33  ;;  %1939 = vmatprep.mubr.msk.f32.mxu0 %vm256_vm0, %v652_v38 }
 0x187   : > { %v2088_v48 = vpop.eup %2087  ;;  %v608_v42 = vadd.f32 1e-05, %v576_v31  ;;  %v593_v20 = vadd.f32 1e-05, %v561_v7  ;;  %v668_v46 = vmul.f32 %v2086_v10, %v2689_v51 }
 0x188   : > { %v545_v36 = vpop.xlane.xlu1 %544  ;;  %v653_v34 = vmul.f32 %v2088_v48, %v2698_v41 }
 0x189   : > { %2101 = vrsqrt.f32 %v608_v42  ;;  %v577_v37 = vmul.f32 0.0625, %v545_v36  ;;  %1963 = vmatprep.mubr.msk.f32.mxu1 %vm256_vm0, %v668_v46 }
 0x18a   : > { %v2090_v50 = vpop.eup %2089  ;;  %2103 = vrsqrt.f32 %v593_v20  ;;  %1940 = vmatmul.mubr.msk.f32.gmra.mxu0 %vm256_vm0, %v653_v34 }
 0x18b   : > { %v2092_v13 = vpop.eup %2091  ;;  %v609_v47 = vadd.f32 1e-05, %v577_v37  ;;  %v669_v1 = vmul.f32 %v2090_v50, %v2701_v4 }
 0x18c   : > { %v654_v26 = vmul.f32 %v2092_v13, %v2710_v23 }
 0x18d   : > { %2105 = vrsqrt.f32 %v609_v47  ;;  %1964 = vmatmul.mubr.msk.f32.gmra.mxu1 %vm256_vm0, %v669_v1 }
 0x18e   : > { %v2094_v51 = vpop.eup %2093  ;;  %1942 = vmatprep.mubr.msk.f32.mxu0 %vm256_vm0, %v654_v26 }
 0x18f   : > { %v2096_v41 = vpop.eup %2095  ;;  %v670_v54 = vmul.f32 %v2094_v51, %v2713_v45 }
 0x190   : > { %v655_v11 = vmul.f32 %v2096_v41, %v2722_v39 }
 0x191   : > { %1966 = vmatprep.mubr.msk.f32.mxu1 %vm256_vm0, %v670_v54 }
 0x192   : > { %v2098_v52 = vpop.eup %2097  ;;  %1943 = vmatmul.mubr.msk.f32.gmra.mxu0 %vm256_vm0, %v655_v11 }
 0x193   : > { %v2100_v58 = vpop.eup %2099  ;;  %v671_v4 = vmul.f32 %v2098_v52, %v2725_v49 }
 0x194   : > { %v656_v23 = vmul.f32 %v2100_v58, %v2734_v8 }
 0x195   : > { %1967 = vmatmul.mubr.msk.f32.gmra.mxu1 %vm256_vm0, %v671_v4 }
 0x196   : > { %v2102_v24 = vpop.eup %2101  ;;  %1945 = vmatprep.mubr.msk.f32.mxu0 %vm256_vm0, %v656_v23 }
 0x197   : > { %v2104_v62 = vpop.eup %2103  ;;  %v672_v45 = vmul.f32 %v2102_v24, %v2737_v53 }
 0x198   : > { %v657_v39 = vmul.f32 %v2104_v62, %v2746_v12 }
 0x199   : > { %1969 = vmatprep.mubr.msk.f32.mxu1 %vm256_vm0, %v672_v45 }
 0x19a   : > { %v2106_v17 = vpop.eup %2105  ;;  %1946 = vmatmul.mubr.msk.f32.gmra.mxu0 %vm256_vm0, %v657_v39 }
 0x19b   : > { %v673_v63 = vmul.f32 %v2106_v17, %v2749_v57 }
 0x19d   : > { %1970 = vmatmul.mubr.msk.f32.gmra.mxu1 %vm256_vm0, %v673_v63 }
 0x222   : > { %v1926_v49 = vpop.f32.mrf.mxu0 }
 0x224   : > { %v838_v8 = vpop.f32.mrf.mxu0 }
 0x225   : > { %997 = vxpose.xlu0.b32.start [1/2] (short) (narrow) %v838_v8, 8  ;;  %v1950_v43 = vpop.f32.mrf.mxu1 }
 0x227   : > { %v918_v40 = vpop.f32.mrf.mxu1 }
 0x229   : > { %998 = vxpose.xlu0.b32.end [2/2] (short) (narrow) %v1926_v49, 8 }
 0x22a   : > { %v1929_v3 = vpop.f32.mrf.mxu0 }
 0x22c   : > { %v848_v27 = vpop.f32.mrf.mxu0 }
 0x22d   : > { %1253 = vxpose.xlu0.b32.start [1/2] (short) (narrow) %v918_v40, 8  ;;  %1029 = vxpose.xlu1.b32.start [1/2] (short) (narrow) %v848_v27, 8  ;;  %v1953_v53 = vpop.f32.mrf.mxu1 }
 0x22f   : > { %v928_v6 = vpop.f32.mrf.mxu1 }
 0x231   : > { %1254 = vxpose.xlu0.b32.end [2/2] (short) (narrow) %v1950_v43, 8  ;;  %1030 = vxpose.xlu1.b32.end [2/2] (short) (narrow) %v1929_v3, 8 }
 0x232   : > { %v1932_v12 = vpop.f32.mrf.mxu0 }
 0x234   : > { %v858_v2 = vpop.f32.mrf.mxu0 }
 0x235   : > { %1285 = vxpose.xlu1.b32.start [1/2] (short) (narrow) %v928_v6, 8  ;;  %1061 = vxpose.xlu0.b32.start [1/2] (short) (narrow) %v858_v2, 8  ;;  %v1956_v57 = vpop.f32.mrf.mxu1 }
 0x237   : > { %v938_v14 = vpop.f32.mrf.mxu1 }
 0x239   : > { %1286 = vxpose.xlu1.b32.end [2/2] (short) (narrow) %v1953_v53, 8  ;;  %1062 = vxpose.xlu0.b32.end [2/2] (short) (narrow) %v1932_v12, 8 }
 0x23a   : > { %v1935_v56 = vpop.f32.mrf.mxu0 }
 0x23c   : > { %v868_v21 = vpop.f32.mrf.mxu0 }
 0x23d   : > { %1317 = vxpose.xlu0.b32.start [1/2] (short) (narrow) %v938_v14, 8  ;;  %1093 = vxpose.xlu1.b32.start [1/2] (short) (narrow) %v868_v21, 8  ;;  %v1959_v28 = vpop.f32.mrf.mxu1 }
 0x23f   : > { %v948_v18 = vpop.f32.mrf.mxu1 }
 0x241   : > { %1318 = vxpose.xlu0.b32.end [2/2] (short) (narrow) %v1956_v57, 8  ;;  %1094 = vxpose.xlu1.b32.end [2/2] (short) (narrow) %v1935_v56, 8 }
 0x242   : > { %v1938_v59 = vpop.f32.mrf.mxu0 }
 0x244   : > { %v878_v19 = vpop.f32.mrf.mxu0 }
 0x245   : > { %1349 = vxpose.xlu1.b32.start [1/2] (short) (narrow) %v948_v18, 8  ;;  %1125 = vxpose.xlu0.b32.start [1/2] (short) (narrow) %v878_v19, 8  ;;  %v1962_v22 = vpop.f32.mrf.mxu1 }
 0x247   : > { %v958_v5 = vpop.f32.mrf.mxu1 }
 0x249   : > { %1350 = vxpose.xlu1.b32.end [2/2] (short) (narrow) %v1959_v28, 8  ;;  %1126 = vxpose.xlu0.b32.end [2/2] (short) (narrow) %v1938_v59, 8 }
 0x24a   : > { %v1941_v60 = vpop.f32.mrf.mxu0 }
 0x24c   : > { %v888_v61 = vpop.f32.mrf.mxu0 }
 0x24d   : > { %1381 = vxpose.xlu0.b32.start [1/2] (short) (narrow) %v958_v5, 8  ;;  %1157 = vxpose.xlu1.b32.start [1/2] (short) (narrow) %v888_v61, 8  ;;  %v1965_v55 = vpop.f32.mrf.mxu1 }
 0x24f   : > { %v968_v44 = vpop.f32.mrf.mxu1 }
 0x251   : > { %1382 = vxpose.xlu0.b32.end [2/2] (short) (narrow) %v1962_v22, 8  ;;  %1158 = vxpose.xlu1.b32.end [2/2] (short) (narrow) %v1941_v60, 8 }
 0x252   : > { %v1944_v25 = vpop.f32.mrf.mxu0 }
 0x254   : > { %v898_v15 = vpop.f32.mrf.mxu0 }
 0x255   : > { %1413 = vxpose.xlu1.b32.start [1/2] (short) (narrow) %v968_v44, 8  ;;  %1189 = vxpose.xlu0.b32.start [1/2] (short) (narrow) %v898_v15, 8  ;;  %v1968_v0 = vpop.f32.mrf.mxu1 }
 0x257   : > { %v978_v30 = vpop.f32.mrf.mxu1 }
 0x259   : > { %1414 = vxpose.xlu1.b32.end [2/2] (short) (narrow) %v1965_v55, 8  ;;  %1190 = vxpose.xlu0.b32.end [2/2] (short) (narrow) %v1944_v25, 8 }
 0x25a   : > { %v1947_v16 = vpop.f32.mrf.mxu0 }
 0x25c   : > { %v908_v32 = vpop.f32.mrf.mxu0 }
 0x25d   : > { %1445 = vxpose.xlu0.b32.start [1/2] (short) (narrow) %v978_v30, 8  ;;  %1221 = vxpose.xlu1.b32.start [1/2] (short) (narrow) %v908_v32, 8  ;;  %v1971_v33 = vpop.f32.mrf.mxu1 }
 0x25f   : > { %v988_v35 = vpop.f32.mrf.mxu1 }
 0x261   : > { %1446 = vxpose.xlu0.b32.end [2/2] (short) (narrow) %v1968_v0, 8  ;;  %1222 = vxpose.xlu1.b32.end [2/2] (short) (narrow) %v1947_v16, 8 }
 0x265   : > { %1477 = vxpose.xlu1.b32.start [1/2] (short) (narrow) %v988_v35, 8 }
 0x269   : > { %1478 = vxpose.xlu1.b32.end [2/2] (short) (narrow) %v1971_v33, 8 }
 0x2a1   : > { %v1013_v29 = vpop.trf.xlu0 }
 0x2a2   : > { %v2828_v38 = vadd.f32 %v1878_v9, %v1013_v29 }
 0x2a4   : > { %v1532_v31 = vsel %vm256_vm0, %v2828_v38, -inf }
 0x2a5   : > { %1533 = vmax.xlane.f32.xlu0 %v1532_v31 }
 0x2a9   : > { %v1045_v7 = vpop.trf.xlu1  ;;  %v1269_v10 = vpop.trf.xlu0 }
 0x2aa   : > { %v2832_v48 = vadd.f32 %v1878_v9, %v1045_v7  ;;  %v2834_v42 = vadd.f32 %v1878_v9, %v1269_v10 }
 0x2ac   : > { %v1535_v20 = vsel %vm256_vm0, %v2832_v48, -inf  ;;  %v1556_v46 = vsel %vm256_vm0, %v2834_v42, -inf }
 0x2ad   : > { %1536 = vmax.xlane.f32.xlu1 %v1535_v20  ;;  %1557 = vmax.xlane.f32.xlu0 %v1556_v46 }
 0x2b1   : > { %v1301_v36 = vpop.trf.xlu1  ;;  %v1077_v34 = vpop.trf.xlu0 }
 0x2b2   : > { %v2840_v37 = vadd.f32 %v1878_v9, %v1301_v36  ;;  %v2842_v50 = vadd.f32 %v1878_v9, %v1077_v34 }
 0x2b4   : > { %v1559_v13 = vsel %vm256_vm0, %v2840_v37, -inf  ;;  %v1538_v47 = vsel %vm256_vm0, %v2842_v50, -inf }
 0x2b5   : > { %1560 = vmax.xlane.f32.xlu1 %v1559_v13  ;;  %1539 = vmax.xlane.f32.xlu0 %v1538_v47 }
 0x2b9   : > { %v1109_v1 = vpop.trf.xlu1  ;;  %v1333_v26 = vpop.trf.xlu0 }
 0x2ba   : > { %v2848_v51 = vadd.f32 %v1878_v9, %v1109_v1  ;;  %v2850_v41 = vadd.f32 %v1878_v9, %v1333_v26 }
 0x2bc   : > { %v1541_v54 = vsel %vm256_vm0, %v2848_v51, -inf  ;;  %v1562_v11 = vsel %vm256_vm0, %v2850_v41, -inf }
 0x2bd   : > { %1542 = vmax.xlane.f32.xlu1 %v1541_v54  ;;  %1563 = vmax.xlane.f32.xlu0 %v1562_v11 }
 0x2c1   : > { %v1365_v52 = vpop.trf.xlu1  ;;  %v1141_v58 = vpop.trf.xlu0 }
 0x2c2   : > { %v2856_v4 = vadd.f32 %v1878_v9, %v1365_v52  ;;  %v2858_v23 = vadd.f32 %v1878_v9, %v1141_v58 }
 0x2c4   : > { %v1565_v24 = vsel %vm256_vm0, %v2856_v4, -inf  ;;  %v1544_v62 = vsel %vm256_vm0, %v2858_v23, -inf }
 0x2c5   : > { %1566 = vmax.xlane.f32.xlu1 %v1565_v24  ;;  %1545 = vmax.xlane.f32.xlu0 %v1544_v62 }
 0x2c9   : > { %v1173_v45 = vpop.trf.xlu1  ;;  %v1397_v39 = vpop.trf.xlu0 }
 0x2ca   : > { %v2864_v17 = vadd.f32 %v1878_v9, %v1173_v45  ;;  %v2866_v63 = vadd.f32 %v1878_v9, %v1397_v39 }
 0x2cc   : > { %v1547_v49 = vsel %vm256_vm0, %v2864_v17, -inf  ;;  %v1568_v8 = vsel %vm256_vm0, %v2866_v63, -inf }
 0x2cd   : > { %1548 = vmax.xlane.f32.xlu1 %v1547_v49  ;;  %1569 = vmax.xlane.f32.xlu0 %v1568_v8 }
 0x2d1   : > { %v1429_v43 = vpop.trf.xlu1  ;;  %v1205_v3 = vpop.trf.xlu0 }
 0x2d2   : > { %v2872_v40 = vadd.f32 %v1878_v9, %v1429_v43  ;;  %v2874_v27 = vadd.f32 %v1878_v9, %v1205_v3 }
 0x2d4   : > { %v1571_v53 = vsel %vm256_vm0, %v2872_v40, -inf  ;;  %v1550_v12 = vsel %vm256_vm0, %v2874_v27, -inf }
 0x2d5   : > { %1572 = vmax.xlane.f32.xlu1 %v1571_v53  ;;  %1551 = vmax.xlane.f32.xlu0 %v1550_v12 }
 0x2d9   : > { %v1237_v6 = vpop.trf.xlu1  ;;  %v1461_v2 = vpop.trf.xlu0 }
 0x2da   : > { %v2880_v57 = vadd.f32 %v1878_v9, %v1237_v6  ;;  %v2882_v56 = vadd.f32 %v1878_v9, %v1461_v2 }
 0x2dc   : > { %v1553_v14 = vsel %vm256_vm0, %v2880_v57, -inf  ;;  %v1574_v21 = vsel %vm256_vm0, %v2882_v56, -inf }
 0x2dd   : > { %1554 = vmax.xlane.f32.xlu1 %v1553_v14  ;;  %1575 = vmax.xlane.f32.xlu0 %v1574_v21 }
 0x2e1   : > { %v1493_v28 = vpop.trf.xlu1 }
 0x2e2   : > { %v2888_v59 = vadd.f32 %v1878_v9, %v1493_v28 }
 0x2e4   : > { %v1577_v18 = vsel %vm256_vm0, %v2888_v59, -inf }
 0x2e5   : > { %1578 = vmax.xlane.f32.xlu1 %v1577_v18 }
 0x32e   : > { %v1534_v19 = vpop.xlane.xlu0 %1533 }
 0x32f   : > { %v1580_v22 = vsub.f32 %v2828_v38, %v1534_v19 }
 0x331   : > { %v1596_v60 = vmul.f32 1.442695, %v1580_v22 }
 0x333   : > { %2107 = vpow2.f32 %v1596_v60 }
 0x336   : > { %v1537_v5 = vpop.xlane.xlu1 %1536  ;;  %v1558_v61 = vpop.xlane.xlu0 %1557 }
 0x337   : > { %v1581_v55 = vsub.f32 %v2832_v48, %v1537_v5  ;;  %v1588_v25 = vsub.f32 %v2834_v42, %v1558_v61 }
 0x339   : > { %v1598_v44 = vmul.f32 1.442695, %v1581_v55  ;;  %v1612_v15 = vmul.f32 1.442695, %v1588_v25 }
 0x33b   : > { %2109 = vpow2.f32 %v1598_v44 }
 0x33c   : > { %2111 = vpow2.f32 %v1612_v15 }
 0x33e   : > { %v1561_v0 = vpop.xlane.xlu1 %1560  ;;  %v1540_v16 = vpop.xlane.xlu0 %1539 }
 0x33f   : > { %v1589_v30 = vsub.f32 %v2840_v37, %v1561_v0  ;;  %v1582_v32 = vsub.f32 %v2842_v50, %v1540_v16 }
 0x340   : > { %v2897_v33 = vpop.eup %2107 }
 0x341   : > { %v1614_v35 = vmul.f32 1.442695, %v1589_v30  ;;  %v1600_v9 = vmul.f32 1.442695, %v1582_v32  ;;  %v1628_v29 = vsel %vm256_vm0, %v2897_v33, 0.0 }
 0x342   : > { %1629 = vadd.xlane.f32.xlu0 %v1628_v29 }
 0x343   : > { %2113 = vpow2.f32 %v1614_v35 }
 0x344   : > { %2115 = vpow2.f32 %v1600_v9 }
 0x346   : > { %v1543_v38 = vpop.xlane.xlu1 %1542  ;;  %v1564_v31 = vpop.xlane.xlu0 %1563 }
 0x347   : > { %v1583_v7 = vsub.f32 %v2848_v51, %v1543_v38  ;;  %v1590_v10 = vsub.f32 %v2850_v41, %v1564_v31 }
 0x348   : > { %v2903_v48 = vpop.eup %2109 }
 0x349   : > { %v2905_v42 = vpop.eup %2111  ;;  %v1602_v20 = vmul.f32 1.442695, %v1583_v7  ;;  %v1616_v46 = vmul.f32 1.442695, %v1590_v10  ;;  %v1631_v36 = vsel %vm256_vm0, %v2903_v48, 0.0 }
 0x34a   : > { %1632 = vadd.xlane.f32.xlu1 %v1631_v36  ;;  %v1652_v34 = vsel %vm256_vm0, %v2905_v42, 0.0 }
 0x34b   : > { %2117 = vpow2.f32 %v1602_v20  ;;  %1653 = vadd.xlane.f32.xlu0 %v1652_v34 }
 0x34c   : > { %2119 = vpow2.f32 %v1616_v46 }
 0x34e   : > { %v1567_v37 = vpop.xlane.xlu1 %1566  ;;  %v1546_v50 = vpop.xlane.xlu0 %1545 }
 0x34f   : > { %v1591_v13 = vsub.f32 %v2856_v4, %v1567_v37  ;;  %v1584_v47 = vsub.f32 %v2858_v23, %v1546_v50 }
 0x350   : > { %v2913_v1 = vpop.eup %2113 }
 0x351   : > { %v2915_v26 = vpop.eup %2115  ;;  %v1618_v51 = vmul.f32 1.442695, %v1591_v13  ;;  %v1604_v41 = vmul.f32 1.442695, %v1584_v47  ;;  %v1655_v54 = vsel %vm256_vm0, %v2913_v1, 0.0 }
 0x352   : > { %1656 = vadd.xlane.f32.xlu1 %v1655_v54  ;;  %v1634_v11 = vsel %vm256_vm0, %v2915_v26, 0.0 }
 0x353   : > { %2121 = vpow2.f32 %v1618_v51  ;;  %1635 = vadd.xlane.f32.xlu0 %v1634_v11 }
 0x354   : > { %2123 = vpow2.f32 %v1604_v41 }
 0x356   : > { %v1549_v52 = vpop.xlane.xlu1 %1548  ;;  %v1570_v58 = vpop.xlane.xlu0 %1569 }
 0x357   : > { %v1585_v4 = vsub.f32 %v2864_v17, %v1549_v52  ;;  %v1592_v23 = vsub.f32 %v2866_v63, %v1570_v58 }
 0x358   : > { %v2923_v24 = vpop.eup %2117 }
 0x359   : > { %v2925_v62 = vpop.eup %2119  ;;  %v1606_v45 = vmul.f32 1.442695, %v1585_v4  ;;  %v1620_v39 = vmul.f32 1.442695, %v1592_v23  ;;  %v1637_v49 = vsel %vm256_vm0, %v2923_v24, 0.0 }
 0x35a   : > { %1638 = vadd.xlane.f32.xlu1 %v1637_v49  ;;  %v1658_v8 = vsel %vm256_vm0, %v2925_v62, 0.0 }
 0x35b   : > { %2125 = vpow2.f32 %v1606_v45  ;;  %1659 = vadd.xlane.f32.xlu0 %v1658_v8 }
 0x35c   : > { %2127 = vpow2.f32 %v1620_v39 }
 0x35e   : > { %v1573_v43 = vpop.xlane.xlu1 %1572  ;;  %v1552_v17 = vpop.xlane.xlu0 %1551 }
 0x35f   : > { %v1593_v63 = vsub.f32 %v2872_v40, %v1573_v43  ;;  %v1586_v3 = vsub.f32 %v2874_v27, %v1552_v17 }
 0x360   : > { %v2933_v53 = vpop.eup %2121 }
 0x361   : > { %v2935_v12 = vpop.eup %2123  ;;  %v1622_v6 = vmul.f32 1.442695, %v1593_v63  ;;  %v1608_v2 = vmul.f32 1.442695, %v1586_v3  ;;  %v1661_v14 = vsel %vm256_vm0, %v2933_v53, 0.0 }
 0x362   : > { %1662 = vadd.xlane.f32.xlu1 %v1661_v14  ;;  %v1640_v21 = vsel %vm256_vm0, %v2935_v12, 0.0 }
 0x363   : > { %2129 = vpow2.f32 %v1622_v6  ;;  %1641 = vadd.xlane.f32.xlu0 %v1640_v21 }
 0x364   : > { %2131 = vpow2.f32 %v1608_v2 }
 0x366   : > { %v1555_v28 = vpop.xlane.xlu1 %1554  ;;  %v1576_v40 = vpop.xlane.xlu0 %1575 }
 0x367   : > { %v1587_v27 = vsub.f32 %v2880_v57, %v1555_v28  ;;  %v1594_v18 = vsub.f32 %v2882_v56, %v1576_v40 }
 0x368   : > { %v2943_v19 = vpop.eup %2125 }
 0x369   : > { %v2945_v22 = vpop.eup %2127  ;;  %v1610_v60 = vmul.f32 1.442695, %v1587_v27  ;;  %v1624_v5 = vmul.f32 1.442695, %v1594_v18  ;;  %v1643_v61 = vsel %vm256_vm0, %v2943_v19, 0.0 }
 0x36a   : > { %1644 = vadd.xlane.f32.xlu1 %v1643_v61  ;;  %v1664_v55 = vsel %vm256_vm0, %v2945_v22, 0.0 }
 0x36b   : > { %2133 = vpow2.f32 %v1610_v60  ;;  %1665 = vadd.xlane.f32.xlu0 %v1664_v55 }
 0x36c   : > { %2135 = vpow2.f32 %v1624_v5 }
 0x36e   : > { %v1579_v25 = vpop.xlane.xlu1 %1578 }
 0x36f   : > { %v1595_v57 = vsub.f32 %v2888_v59, %v1579_v25 }
 0x370   : > { %v2952_v56 = vpop.eup %2129 }
 0x371   : > { %v2954_v44 = vpop.eup %2131  ;;  %v1626_v15 = vmul.f32 1.442695, %v1595_v57  ;;  %v1667_v0 = vsel %vm256_vm0, %v2952_v56, 0.0 }
 0x372   : > { %1668 = vadd.xlane.f32.xlu1 %v1667_v0  ;;  %v1646_v16 = vsel %vm256_vm0, %v2954_v44, 0.0 }
 0x373   : > { %2137 = vpow2.f32 %v1626_v15  ;;  %1647 = vadd.xlane.f32.xlu0 %v1646_v16 }
 0x378   : > { %v2960_v30 = vpop.eup %2133 }
 0x379   : > { %v2962_v32 = vpop.eup %2135  ;;  %v1649_v59 = vsel %vm256_vm0, %v2960_v30, 0.0 }
 0x37a   : > { %1650 = vadd.xlane.f32.xlu1 %v1649_v59  ;;  %v1670_v35 = vsel %vm256_vm0, %v2962_v32, 0.0 }
 0x37b   : > { %1671 = vadd.xlane.f32.xlu0 %v1670_v35 }
 0x380   : > { %v2968_v9 = vpop.eup %2137 }
 0x381   : > { %v1673_v29 = vsel %vm256_vm0, %v2968_v9, 0.0 }
 0x382   : > { %1674 = vadd.xlane.f32.xlu1 %v1673_v29 }
 0x3cb   : > { %v1630_v38 = vpop.xlane.xlu0 %1629 }
 0x3cc   : > { %2139 = vrcp.f32 %v1630_v38 }
 0x3d3   : > { %v1633_v31 = vpop.xlane.xlu1 %1632 }
 0x3d4   : > { %2141 = vrcp.f32 %v1633_v31  ;;  %v1654_v7 = vpop.xlane.xlu0 %1653 }
 0x3d5   : > { %2143 = vrcp.f32 %v1654_v7 }
 0x3d9   : > { %v2140_v10 = vpop.eup %2139 }
 0x3da   : > { %v1692_v20 = vmul.f32 %v2140_v10, %v2897_v33 }
 0x3db   : > { %v1657_v46 = vpop.xlane.xlu1 %1656 }
 0x3dc   : > { %1708 = vst.msk [vmem:[%s2974_s19] sm:$0xff] %vm256_vm0, %v1692_v20  ;;  %2145 = vrcp.f32 %v1657_v46  ;;  %v1636_v36 = vpop.xlane.xlu0 %1635 }
 0x3dd   : > { %2147 = vrcp.f32 %v1636_v36 }
 0x3e1   : > { %v2142_v34 = vpop.eup %2141 }
 0x3e2   : > { %v2144_v37 = vpop.eup %2143  ;;  %v1693_v50 = vmul.f32 %v2142_v34, %v2903_v48 }
 0x3e3   : > { %v1700_v13 = vmul.f32 %v2144_v37, %v2905_v42  ;;  %v1639_v33 = vpop.xlane.xlu1 %1638 }
 0x3e4   : > { %1709 = vst.msk [vmem:[%s2974_s19 + $0x8] sm:$0xff] %vm256_vm0, %v1693_v50  ;;  %2149 = vrcp.f32 %v1639_v33  ;;  %v1660_v47 = vpop.xlane.xlu0 %1659 }
 0x3e5   : > { %1716 = vst.msk [vmem:[%s2974_s19 + $0x40] sm:$0xff] %vm256_vm0, %v1700_v13  ;;  %2151 = vrcp.f32 %v1660_v47 }
 0x3e9   : > { %v2146_v51 = vpop.eup %2145 }
 0x3ea   : > { %v2148_v41 = vpop.eup %2147  ;;  %v1701_v54 = vmul.f32 %v2146_v51, %v2913_v1 }
 0x3eb   : > { %v1694_v11 = vmul.f32 %v2148_v41, %v2915_v26  ;;  %v1663_v48 = vpop.xlane.xlu1 %1662 }
 0x3ec   : > { %1717 = vst.msk [vmem:[%s2974_s19 + $0x48] sm:$0xff] %vm256_vm0, %v1701_v54  ;;  %2153 = vrcp.f32 %v1663_v48  ;;  %v1642_v42 = vpop.xlane.xlu0 %1641 }
 0x3ed   : > { %1710 = vst.msk [vmem:[%s2974_s19 + $0x10] sm:$0xff] %vm256_vm0, %v1694_v11  ;;  %2155 = vrcp.f32 %v1642_v42 }
 0x3f1   : > { %v2150_v52 = vpop.eup %2149 }
 0x3f2   : > { %v2152_v58 = vpop.eup %2151  ;;  %v1695_v4 = vmul.f32 %v2150_v52, %v2923_v24 }
 0x3f3   : > { %v1702_v23 = vmul.f32 %v2152_v58, %v2925_v62  ;;  %v1645_v1 = vpop.xlane.xlu1 %1644 }
 0x3f4   : > { %1711 = vst.msk [vmem:[%s2974_s19 + $0x18] sm:$0xff] %vm256_vm0, %v1695_v4  ;;  %2157 = vrcp.f32 %v1645_v1  ;;  %v1666_v26 = vpop.xlane.xlu0 %1665 }
 0x3f5   : > { %1718 = vst.msk [vmem:[%s2974_s19 + $0x50] sm:$0xff] %vm256_vm0, %v1702_v23  ;;  %2159 = vrcp.f32 %v1666_v26 }
 0x3f9   : > { %v2154_v45 = vpop.eup %2153 }
 0x3fa   : > { %v2156_v39 = vpop.eup %2155  ;;  %v1703_v49 = vmul.f32 %v2154_v45, %v2933_v53 }
 0x3fb   : > { %v1696_v8 = vmul.f32 %v2156_v39, %v2935_v12  ;;  %v1669_v24 = vpop.xlane.xlu1 %1668 }
 0x3fc   : > { %1719 = vst.msk [vmem:[%s2974_s19 + $0x58] sm:$0xff] %vm256_vm0, %v1703_v49  ;;  %2161 = vrcp.f32 %v1669_v24  ;;  %v1648_v62 = vpop.xlane.xlu0 %1647 }
 0x3fd   : > { %1712 = vst.msk [vmem:[%s2974_s19 + $0x20] sm:$0xff] %vm256_vm0, %v1696_v8  ;;  %2163 = vrcp.f32 %v1648_v62 }
 0x401   : > { %v2158_v43 = vpop.eup %2157 }
 0x402   : > { %v2160_v17 = vpop.eup %2159  ;;  %v1697_v63 = vmul.f32 %v2158_v43, %v2943_v19 }
 0x403   : > { %v1704_v3 = vmul.f32 %v2160_v17, %v2945_v22  ;;  %v1651_v53 = vpop.xlane.xlu1 %1650 }
 0x404   : > { %1713 = vst.msk [vmem:[%s2974_s19 + $0x28] sm:$0xff] %vm256_vm0, %v1697_v63  ;;  %2165 = vrcp.f32 %v1651_v53  ;;  %v1672_v12 = vpop.xlane.xlu0 %1671 }
 0x405   : > { %1720 = vst.msk [vmem:[%s2974_s19 + $0x60] sm:$0xff] %vm256_vm0, %v1704_v3  ;;  %2167 = vrcp.f32 %v1672_v12 }
 0x409   : > { %v2162_v6 = vpop.eup %2161 }
 0x40a   : > { %v2164_v2 = vpop.eup %2163  ;;  %v1705_v14 = vmul.f32 %v2162_v6, %v2952_v56 }
 0x40b   : > { %v1698_v21 = vmul.f32 %v2164_v2, %v2954_v44  ;;  %v1675_v28 = vpop.xlane.xlu1 %1674 }
 0x40c   : > { %1721 = vst.msk [vmem:[%s2974_s19 + $0x68] sm:$0xff] %vm256_vm0, %v1705_v14  ;;  %2169 = vrcp.f32 %v1675_v28 }
 0x40d   : > { %1714 = vst.msk [vmem:[%s2974_s19 + $0x30] sm:$0xff] %vm256_vm0, %v1698_v21 }
 0x411   : > { %v2166_v40 = vpop.eup %2165 }
 0x412   : > { %v2168_v27 = vpop.eup %2167  ;;  %v1699_v18 = vmul.f32 %v2166_v40, %v2960_v30 }
 0x413   : > { %v1706_v19 = vmul.f32 %v2168_v27, %v2962_v32 }
 0x414   : > { %1715 = vst.msk [vmem:[%s2974_s19 + $0x38] sm:$0xff] %vm256_vm0, %v1699_v18 }
 0x415   : > { %1722 = vst.msk [vmem:[%s2974_s19 + $0x70] sm:$0xff] %vm256_vm0, %v1706_v19 }
 0x419   : > { %v2170_v22 = vpop.eup %2169 }
 0x41a   : > { %v1707_v60 = vmul.f32 %v2170_v22, %v2968_v9 }
 0x41c   : > { %1723 = vst.msk [vmem:[%s2974_s19 + $0x78] sm:$0xff] %vm256_vm0, %v1707_v60 }
 0x41d   : > { %2212 = shalt.err (!%p2209_p7)
}
 0x41e   : > { %s2213_s7 = scalar_lea.hbm %s3025_s30, 2048  ;;  %s2217_s10 = scalar_lea.hbm %s3081_s3, 4096 }
 0x41f   : > { %p2214_p10 = scmp.ne.s32.totalorder %s3025_s30, %s2213_s7  ;;  %p2218_p2 = scmp.lt.s32.totalorder %s3025_s30, %s3081_s3 }
 0x420   : > { %p2219_p8 = scmp.lt.s32.totalorder %s2217_s10, %s2213_s7 }
 0x421   : > { %p2215_p4 = pnand %p2214_p10, %p2358_p9 }
 0x422   : > { %p2220_p12 = por %p2219_p8, %p2218_p2 }
 0x423   : > { %p2216_p13 = pneg %p2215_p4 }
 0x425   : > { %p2221_p0 = pnand %p2220_p12, %p2216_p13 }
 0x427   : > { %2224 = shalt.err (!%p2221_p0)
}
 0x428   : > { %s2285_s19 = smov 128   ;;  %s2286_s21 = smov 8  }
 0x429   : > { %1978 = dma.vmem_to_hbm [thread:$0]  (%p2358_p9), %s3027_s22, 2048, %s3025_s30, %s1725_s4, %s2285_s19, %s2285_s19, %s2286_s21  }
 0x42a PF: > { %s1755_s23 = sand.u32 1, %s2259_s12   ;;  %p3087_p1 = scmp.ge.s32.totalorder %s2279_s17, 2 }
 0x42b   : > { %s1756_s29 = scalar_lea.sflag [#allocation4], %s1755_s23 }
 0x42c   : > { %p1985_p3 = pnand %p3087_p1, %p2365_p11 }
 0x42e   : > { %p1986_p5 = pneg %p1985_p3 }
 0x430   : > { %2254 = dma.done.wait (%p1986_p5), %s1756_s29, 2048  }
 0x431   : > { %2256 = vsyncadd (%p1986_p5), %s1756_s29, 4294965248  ;;  %s19_s17 = sadd.s32 1, %s2279_s17   ;;  %s3088_s12 = smov %s2263_s13 }
 0x432   : > { %p16_p6 = scmp.ge.s32.totalorder %s19_s17, 4   ;;  %s3089_s13 = smov %s2267_s14 }
 0x433   : > { %s3090_s14 = smov %s2363_s26  ;;  %s3091_s15 = smov %s2275_s16 }
 0x434   : > { %s3092_s16 = smov %s3094_s20  ;;  %18 = sbr.rel (!%p16_p6) target bundleno = 6 (0x6), region = 80 }
 0x439   :  { %1761 = vsyncpa [#allocation3], 1 }
 0x43a   :  { %1763 = vsyncpa [#allocation3 + $0x1], 1 }
 0x43b   :  { %1764 = vsyncpa [#allocation4], 1 }
 0x43c   :  { %1766 = vsyncpa [#allocation4 + $0x1], 1 }

</bundles_post_ra>
